<compile_context>
chip_gen: v6e
topology: v6e:2x2x1
jax: 0.10.0
libtpu: 0.0.40
codegen_flags: <defaults>
</compile_context>

<pallas_src>
import jax
import jax.numpy as jnp
from jax import lax
from jax.experimental import pallas as pl
from jax.experimental.pallas import tpu as pltpu

EPS = 1e-5          # nn.InstanceNorm2d default eps (affine=False)
NEG_SLOPE = 0.01    # nn.LeakyReLU default negative_slope


# --------------------------------- kernel ------------------------------------

def _make_kernel(H, W, C, batch_tile, cdt):
    HW = H * W
    inv_hw = 1.0 / HW

    def vshift(a, sy, row_id):
        # a is (C, H*W) with spatial flattened row-major: lane p = y*W + x.
        # Returns J with J[y, x] = a[reflect(y + sy), x] (1-pixel reflection).
        if sy == 0:
            return a
        bulk = pltpu.roll(a, (-sy * W) % HW, axis=1)   # a[y+sy, x] (wraps at ends)
        edge = pltpu.roll(a, (sy * W) % HW, axis=1)    # supplies reflected border row
        edge_row = H - 1 if sy > 0 else 0
        return jnp.where(row_id == edge_row, edge, bulk)

    def hshift(a, sx, col_id):
        # Returns K with K[y, x] = a[y, reflect(x + sx)].
        if sx == 0:
            return a
        bulk = pltpu.roll(a, (-sx) % HW, axis=1)       # a[y, x+sx] (wraps at row ends)
        edge = pltpu.roll(a, sx % HW, axis=1)          # supplies reflected border col
        edge_col = W - 1 if sx > 0 else 0
        return jnp.where(col_id == edge_col, edge, bulk)

    def conv3x3_reflect(a, w_ref, bias, row_id, col_id):
        # ReflectionPad2d(1) + Conv2d(3x3) as 9 shifted-slab matmuls:
        #   out += weight[:, :, dy, dx] @ slab(sy=dy-1, sx=dx-1)
        # a: (C, H*W) f32; w_ref: (9, C, C) cdt; bias: (C, 1) f32.
        acc = None
        k = 0
        for sy in (-1, 0, 1):
            a_v = vshift(a, sy, row_id)
            for sx in (-1, 0, 1):
                slab = hshift(a_v, sx, col_id)
                t = jnp.dot(w_ref[k], slab.astype(cdt),
                            preferred_element_type=jnp.float32)
                acc = t if acc is None else acc + t
                k += 1
        return acc + bias                              # single hoisted broadcast

    def instance_norm(y):
        # Two-pass per-channel stats over the H*W lane axis (f32).
        mean = jnp.sum(y, axis=1, keepdims=True) * inv_hw
        yc = y - mean
        var = jnp.sum(yc * yc, axis=1, keepdims=True) * inv_hw
        return yc * lax.rsqrt(var + EPS)

    def kernel(rc_ref, x_ref, w1_ref, b1_ref, w2_ref, b2_ref, o_ref):
        # rc_ref: (2, H*W) int32 — row 0 = y index per lane, row 1 = x index
        # (precomputed host-side so there is no in-kernel integer div/mod).
        row_id = rc_ref[0:1, :]
        col_id = rc_ref[1:2, :]
        b1 = b1_ref[...]
        b2 = b2_ref[...]

        for bi in range(batch_tile):                   # static unroll over samples
            x = x_ref[bi].astype(jnp.float32)          # (C, H*W), lane-dense
            y = instance_norm(conv3x3_reflect(x, w1_ref, b1, row_id, col_id))
            y = jnp.where(y >= 0, y, NEG_SLOPE * y)    # LeakyReLU(0.01)
            y = instance_norm(conv3x3_reflect(y, w2_ref, b2, row_id, col_id))
            # Residual add: re-read x_ref (block stays VMEM-resident) instead of
            # keeping a live copy across both convs; store is full-lane (H*W).
            o_ref[bi] = (x_ref[bi].astype(jnp.float32) + y).astype(o_ref.dtype)

    return kernel


# -------------------------------- wrapper -------------------------------------

def residual_block(x_nchw, w1_oihw, b1, w2_oihw, b2, *,
                   use_bf16_mxu=True, batch_tile=1):
    """Fused ResidualBlock forward.

    x: (N, C, H, W) float32 (PyTorch NCHW), weights OIHW (C, C, 3, 3), biases (C,).
    NCHW is the native layout of this kernel (channels on sublanes, H*W on lanes).
    """
    N, C, H, W = x_nchw.shape
    HW = H * W
    assert H >= 2 and W >= 2, "ReflectionPad2d(1) needs H >= 2 and W >= 2"
    assert N % batch_tile == 0, "batch_tile must divide N"

    cdt = jnp.bfloat16 if use_bf16_mxu else jnp.float32

    # Per-tap weights: w_taps[k] = weight[:, :, dy, dx] with k = dy*3 + dx,
    # laid out (C_out, C_in) so each tap is one (C, C) @ (C, H*W) matmul.
    w1r = jnp.transpose(w1_oihw, (2, 3, 0, 1)).reshape(9, C, C).astype(cdt)
    w2r = jnp.transpose(w2_oihw, (2, 3, 0, 1)).reshape(9, C, C).astype(cdt)
    b1r = b1.reshape(C, 1).astype(jnp.float32)
    b2r = b2.reshape(C, 1).astype(jnp.float32)

    # Flat row/col index per lane (host-side), used for the reflection masks.
    p = jnp.arange(HW, dtype=jnp.int32)
    rc = jnp.stack([p // W, p % W], axis=0)            # (2, H*W) int32

    # Lane-dense view: spatial flattened onto the lane axis (free HBM reshape).
    xf = x_nchw.reshape(N, C, HW)

    kernel = _make_kernel(H, W, C, batch_tile, cdt)

    out = pl.pallas_call(
        kernel,
        out_shape=jax.ShapeDtypeStruct((N, C, HW), x_nchw.dtype),
        grid=(N // batch_tile,),
        in_specs=[
            pl.BlockSpec((2, HW), lambda n: (0, 0)),               # row/col ids
            pl.BlockSpec((batch_tile, C, HW), lambda n: (n, 0, 0)),  # x block
            pl.BlockSpec((9, C, C), lambda n: (0, 0, 0)),          # conv1 taps
            pl.BlockSpec((C, 1), lambda n: (0, 0)),                # conv1 bias
            pl.BlockSpec((9, C, C), lambda n: (0, 0, 0)),          # conv2 taps
            pl.BlockSpec((C, 1), lambda n: (0, 0)),                # conv2 bias
        ],
        out_specs=pl.BlockSpec((batch_tile, C, HW), lambda n: (n, 0, 0)),
        compiler_params=pltpu.CompilerParams(
            dimension_semantics=("parallel",)),
    )(rc, xf, w1r, b1r, w2r, b2r)
    return out.reshape(N, C, H, W)


# ----------------------------- pure-JAX reference -----------------------------

def residual_block_ref(x, w1, b1, w2, b2):
    def pad(z):
        return jnp.pad(z, ((0, 0), (0, 0), (1, 1), (1, 1)), mode="reflect")

    def conv(z, w, b):
        y = jax.lax.conv_general_dilated(
            z, w, window_strides=(1, 1), padding="VALID",
            dimension_numbers=("NCHW", "OIHW", "NCHW"))
        return y + b[None, :, None, None]

    def inorm(z):
        m = z.mean(axis=(2, 3), keepdims=True)
        v = ((z - m) ** 2).mean(axis=(2, 3), keepdims=True)
        return (z - m) / jnp.sqrt(v + EPS)

    y = inorm(conv(pad(x), w1, b1))
    y = jnp.where(y >= 0, y, NEG_SLOPE * y)
    y = inorm(conv(pad(y), w2, b2))
    return x + y


# ---------------------------------- main --------------------------------------

if __name__ == "__main__":
    N, C, H, W = 2, 4, 16, 16
    key = jax.random.PRNGKey(0)
    kx, kw1, kb1, kw2, kb2 = jax.random.split(key, 5)

    x = jax.random.normal(kx, (N, C, H, W), dtype=jnp.float32)
    w1 = jax.random.normal(kw1, (C, C, 3, 3), dtype=jnp.float32) * 0.1
    b1 = jax.random.normal(kb1, (C,), dtype=jnp.float32) * 0.1
    w2 = jax.random.normal(kw2, (C, C, 3, 3), dtype=jnp.float32) * 0.1
    b2 = jax.random.normal(kb2, (C,), dtype=jnp.float32) * 0.1

    ref = residual_block_ref(x, w1, b1, w2, b2)

    # Exact-precision path (f32 MXU operands), 2 samples per grid step.
    out_f32 = jax.block_until_ready(
        residual_block(x, w1, b1, w2, b2, use_bf16_mxu=False, batch_tile=2))
    assert out_f32.shape == (N, C, H, W)
    assert jnp.allclose(out_f32, ref, atol=1e-4, rtol=1e-4), "f32 path mismatch"

    # Fast path (bf16 MXU operands, f32 accumulate), 1 sample per (parallel) step.
    out_bf16 = jax.block_until_ready(
        residual_block(x, w1, b1, w2, b2, use_bf16_mxu=True, batch_tile=1))
    assert out_bf16.shape == (N, C, H, W)
    assert jnp.allclose(out_bf16, ref, atol=5e-2, rtol=5e-2), "bf16 path mismatch"

    print("KERNEL_OK")
</pallas_src>

<mosaic_0001>
module attributes {stable_mosaic.version = 11 : i64} {
  func.func @kernel(%arg0: i32, %arg1: memref<2x256xi32, #tpu.memory_space<vmem>>, %arg2: memref<2x4x256xf32, #tpu.memory_space<vmem>>, %arg3: memref<9x4x4xf32, #tpu.memory_space<vmem>>, %arg4: memref<4x1xf32, #tpu.memory_space<vmem>>, %arg5: memref<9x4x4xf32, #tpu.memory_space<vmem>>, %arg6: memref<4x1xf32, #tpu.memory_space<vmem>>, %arg7: memref<2x4x256xf32, #tpu.memory_space<vmem>>) attributes {dimension_semantics = [#tpu.dimension_semantics<parallel>], iteration_bounds = array<i64: 1>, scalar_prefetch = 0 : i64, scratch_operands = 0 : i64, tpu.core_type = #tpu.core_type<tc>, window_params = [{pipeline_mode = #tpu.pipeline_mode<synchronous>, transform_indices = @transform_0, window_bounds = array<i64: 2, 256>}, {transform_indices = @transform_1, window_bounds = array<i64: 2, 4, 256>}, {pipeline_mode = #tpu.pipeline_mode<synchronous>, transform_indices = @transform_2, window_bounds = array<i64: 9, 4, 4>}, {pipeline_mode = #tpu.pipeline_mode<synchronous>, transform_indices = @transform_3, window_bounds = array<i64: 4, 1>}, {pipeline_mode = #tpu.pipeline_mode<synchronous>, transform_indices = @transform_4, window_bounds = array<i64: 9, 4, 4>}, {pipeline_mode = #tpu.pipeline_mode<synchronous>, transform_indices = @transform_5, window_bounds = array<i64: 4, 1>}, {transform_indices = @transform_6, window_bounds = array<i64: 2, 4, 256>}]} {
    %c0 = arith.constant 0 : index
    %c0_0 = arith.constant 0 : index
    %0 = vector.load %arg1[%c0, %c0_0] : memref<2x256xi32, #tpu.memory_space<vmem>>, vector<1x256xi32>
    %c1 = arith.constant 1 : index
    %c0_1 = arith.constant 0 : index
    %1 = vector.load %arg1[%c1, %c0_1] : memref<2x256xi32, #tpu.memory_space<vmem>>, vector<1x256xi32>
    %c0_2 = arith.constant 0 : index
    %c0_3 = arith.constant 0 : index
    %2 = vector.load %arg4[%c0_2, %c0_3] : memref<4x1xf32, #tpu.memory_space<vmem>>, vector<4x1xf32>
    %c0_4 = arith.constant 0 : index
    %c0_5 = arith.constant 0 : index
    %3 = vector.load %arg6[%c0_4, %c0_5] : memref<4x1xf32, #tpu.memory_space<vmem>>, vector<4x1xf32>
    %c0_6 = arith.constant 0 : index
    %c0_7 = arith.constant 0 : index
    %c0_8 = arith.constant 0 : index
    %4 = vector.load %arg2[%c0_6, %c0_7, %c0_8] : memref<2x4x256xf32, #tpu.memory_space<vmem>>, vector<1x4x256xf32>
    %5 = vector.shape_cast %4 : vector<1x4x256xf32> to vector<4x256xf32>
    %c16_i32 = arith.constant 16 : i32
    %6 = tpu.dynamic_rotate %5 by %c16_i32 dim 1 : vector<4x256xf32>, i32 -> vector<4x256xf32>
    %c240_i32 = arith.constant 240 : i32
    %7 = tpu.dynamic_rotate %5 by %c240_i32 dim 1 : vector<4x256xf32>, i32 -> vector<4x256xf32>
    %c0_i32 = arith.constant 0 : i32
    %8 = vector.broadcast %c0_i32 : i32 to vector<1x256xi32>
    %9 = arith.cmpi eq, %0, %8 : vector<1x256xi32>
    %10 = vector.shape_cast %9 : vector<1x256xi1> to vector<1x256xi1>
    %11 = vector.broadcast %10 : vector<1x256xi1> to vector<4x256xi1>
    %12 = arith.select %11, %7, %6 : vector<4x256xi1>, vector<4x256xf32>
    %c1_i32 = arith.constant 1 : i32
    %13 = tpu.dynamic_rotate %12 by %c1_i32 dim 1 : vector<4x256xf32>, i32 -> vector<4x256xf32>
    %c255_i32 = arith.constant 255 : i32
    %14 = tpu.dynamic_rotate %12 by %c255_i32 dim 1 : vector<4x256xf32>, i32 -> vector<4x256xf32>
    %c0_i32_9 = arith.constant 0 : i32
    %15 = vector.broadcast %c0_i32_9 : i32 to vector<1x256xi32>
    %16 = arith.cmpi eq, %1, %15 : vector<1x256xi32>
    %17 = vector.shape_cast %16 : vector<1x256xi1> to vector<1x256xi1>
    %18 = vector.broadcast %17 : vector<1x256xi1> to vector<4x256xi1>
    %19 = arith.select %18, %14, %13 : vector<4x256xi1>, vector<4x256xf32>
    %c0_10 = arith.constant 0 : index
    %c0_11 = arith.constant 0 : index
    %c0_12 = arith.constant 0 : index
    %20 = vector.load %arg3[%c0_10, %c0_11, %c0_12] : memref<9x4x4xf32, #tpu.memory_space<vmem>>, vector<1x4x4xf32>
    %21 = vector.shape_cast %20 : vector<1x4x4xf32> to vector<4x4xf32>
    %cst = arith.constant dense<0.000000e+00> : vector<4x256xf32>
    %22 = tpu.matmul %21, %19, %cst {dimension_numbers = #tpu.dot_dimension_numbers<[1], [0], [0], [1], [0, 0, 1, 1], [], []>} : vector<4x4xf32>, vector<4x256xf32>, vector<4x256xf32> -> vector<4x256xf32>
    %c1_13 = arith.constant 1 : index
    %c0_14 = arith.constant 0 : index
    %c0_15 = arith.constant 0 : index
    %23 = vector.load %arg3[%c1_13, %c0_14, %c0_15] : memref<9x4x4xf32, #tpu.memory_space<vmem>>, vector<1x4x4xf32>
    %24 = vector.shape_cast %23 : vector<1x4x4xf32> to vector<4x4xf32>
    %cst_16 = arith.constant dense<0.000000e+00> : vector<4x256xf32>
    %25 = tpu.matmul %24, %12, %cst_16 {dimension_numbers = #tpu.dot_dimension_numbers<[1], [0], [0], [1], [0, 0, 1, 1], [], []>} : vector<4x4xf32>, vector<4x256xf32>, vector<4x256xf32> -> vector<4x256xf32>
    %26 = arith.addf %22, %25 : vector<4x256xf32>
    %c255_i32_17 = arith.constant 255 : i32
    %27 = tpu.dynamic_rotate %12 by %c255_i32_17 dim 1 : vector<4x256xf32>, i32 -> vector<4x256xf32>
    %c1_i32_18 = arith.constant 1 : i32
    %28 = tpu.dynamic_rotate %12 by %c1_i32_18 dim 1 : vector<4x256xf32>, i32 -> vector<4x256xf32>
    %c15_i32 = arith.constant 15 : i32
    %29 = vector.broadcast %c15_i32 : i32 to vector<1x256xi32>
    %30 = arith.cmpi eq, %1, %29 : vector<1x256xi32>
    %31 = vector.shape_cast %30 : vector<1x256xi1> to vector<1x256xi1>
    %32 = vector.broadcast %31 : vector<1x256xi1> to vector<4x256xi1>
    %33 = arith.select %32, %28, %27 : vector<4x256xi1>, vector<4x256xf32>
    %c2 = arith.constant 2 : index
    %c0_19 = arith.constant 0 : index
    %c0_20 = arith.constant 0 : index
    %34 = vector.load %arg3[%c2, %c0_19, %c0_20] : memref<9x4x4xf32, #tpu.memory_space<vmem>>, vector<1x4x4xf32>
    %35 = vector.shape_cast %34 : vector<1x4x4xf32> to vector<4x4xf32>
    %cst_21 = arith.constant dense<0.000000e+00> : vector<4x256xf32>
    %36 = tpu.matmul %35, %33, %cst_21 {dimension_numbers = #tpu.dot_dimension_numbers<[1], [0], [0], [1], [0, 0, 1, 1], [], []>} : vector<4x4xf32>, vector<4x256xf32>, vector<4x256xf32> -> vector<4x256xf32>
    %37 = arith.addf %26, %36 : vector<4x256xf32>
    %c1_i32_22 = arith.constant 1 : i32
    %38 = tpu.dynamic_rotate %5 by %c1_i32_22 dim 1 : vector<4x256xf32>, i32 -> vector<4x256xf32>
    %c255_i32_23 = arith.constant 255 : i32
    %39 = tpu.dynamic_rotate %5 by %c255_i32_23 dim 1 : vector<4x256xf32>, i32 -> vector<4x256xf32>
    %c0_i32_24 = arith.constant 0 : i32
    %40 = vector.broadcast %c0_i32_24 : i32 to vector<1x256xi32>
    %41 = arith.cmpi eq, %1, %40 : vector<1x256xi32>
    %42 = vector.shape_cast %41 : vector<1x256xi1> to vector<1x256xi1>
    %43 = vector.broadcast %42 : vector<1x256xi1> to vector<4x256xi1>
    %44 = arith.select %43, %39, %38 : vector<4x256xi1>, vector<4x256xf32>
    %c3 = arith.constant 3 : index
    %c0_25 = arith.constant 0 : index
    %c0_26 = arith.constant 0 : index
    %45 = vector.load %arg3[%c3, %c0_25, %c0_26] : memref<9x4x4xf32, #tpu.memory_space<vmem>>, vector<1x4x4xf32>
    %46 = vector.shape_cast %45 : vector<1x4x4xf32> to vector<4x4xf32>
    %cst_27 = arith.constant dense<0.000000e+00> : vector<4x256xf32>
    %47 = tpu.matmul %46, %44, %cst_27 {dimension_numbers = #tpu.dot_dimension_numbers<[1], [0], [0], [1], [0, 0, 1, 1], [], []>} : vector<4x4xf32>, vector<4x256xf32>, vector<4x256xf32> -> vector<4x256xf32>
    %48 = arith.addf %37, %47 : vector<4x256xf32>
    %c4 = arith.constant 4 : index
    %c0_28 = arith.constant 0 : index
    %c0_29 = arith.constant 0 : index
    %49 = vector.load %arg3[%c4, %c0_28, %c0_29] : memref<9x4x4xf32, #tpu.memory_space<vmem>>, vector<1x4x4xf32>
    %50 = vector.shape_cast %49 : vector<1x4x4xf32> to vector<4x4xf32>
    %cst_30 = arith.constant dense<0.000000e+00> : vector<4x256xf32>
    %51 = tpu.matmul %50, %5, %cst_30 {dimension_numbers = #tpu.dot_dimension_numbers<[1], [0], [0], [1], [0, 0, 1, 1], [], []>} : vector<4x4xf32>, vector<4x256xf32>, vector<4x256xf32> -> vector<4x256xf32>
    %52 = arith.addf %48, %51 : vector<4x256xf32>
    %c255_i32_31 = arith.constant 255 : i32
    %53 = tpu.dynamic_rotate %5 by %c255_i32_31 dim 1 : vector<4x256xf32>, i32 -> vector<4x256xf32>
    %c1_i32_32 = arith.constant 1 : i32
    %54 = tpu.dynamic_rotate %5 by %c1_i32_32 dim 1 : vector<4x256xf32>, i32 -> vector<4x256xf32>
    %c15_i32_33 = arith.constant 15 : i32
    %55 = vector.broadcast %c15_i32_33 : i32 to vector<1x256xi32>
    %56 = arith.cmpi eq, %1, %55 : vector<1x256xi32>
    %57 = vector.shape_cast %56 : vector<1x256xi1> to vector<1x256xi1>
    %58 = vector.broadcast %57 : vector<1x256xi1> to vector<4x256xi1>
    %59 = arith.select %58, %54, %53 : vector<4x256xi1>, vector<4x256xf32>
    %c5 = arith.constant 5 : index
    %c0_34 = arith.constant 0 : index
    %c0_35 = arith.constant 0 : index
    %60 = vector.load %arg3[%c5, %c0_34, %c0_35] : memref<9x4x4xf32, #tpu.memory_space<vmem>>, vector<1x4x4xf32>
    %61 = vector.shape_cast %60 : vector<1x4x4xf32> to vector<4x4xf32>
    %cst_36 = arith.constant dense<0.000000e+00> : vector<4x256xf32>
    %62 = tpu.matmul %61, %59, %cst_36 {dimension_numbers = #tpu.dot_dimension_numbers<[1], [0], [0], [1], [0, 0, 1, 1], [], []>} : vector<4x4xf32>, vector<4x256xf32>, vector<4x256xf32> -> vector<4x256xf32>
    %63 = arith.addf %52, %62 : vector<4x256xf32>
    %c240_i32_37 = arith.constant 240 : i32
    %64 = tpu.dynamic_rotate %5 by %c240_i32_37 dim 1 : vector<4x256xf32>, i32 -> vector<4x256xf32>
    %c16_i32_38 = arith.constant 16 : i32
    %65 = tpu.dynamic_rotate %5 by %c16_i32_38 dim 1 : vector<4x256xf32>, i32 -> vector<4x256xf32>
    %c15_i32_39 = arith.constant 15 : i32
    %66 = vector.broadcast %c15_i32_39 : i32 to vector<1x256xi32>
    %67 = arith.cmpi eq, %0, %66 : vector<1x256xi32>
    %68 = vector.shape_cast %67 : vector<1x256xi1> to vector<1x256xi1>
    %69 = vector.broadcast %68 : vector<1x256xi1> to vector<4x256xi1>
    %70 = arith.select %69, %65, %64 : vector<4x256xi1>, vector<4x256xf32>
    %c1_i32_40 = arith.constant 1 : i32
    %71 = tpu.dynamic_rotate %70 by %c1_i32_40 dim 1 : vector<4x256xf32>, i32 -> vector<4x256xf32>
    %c255_i32_41 = arith.constant 255 : i32
    %72 = tpu.dynamic_rotate %70 by %c255_i32_41 dim 1 : vector<4x256xf32>, i32 -> vector<4x256xf32>
    %c0_i32_42 = arith.constant 0 : i32
    %73 = vector.broadcast %c0_i32_42 : i32 to vector<1x256xi32>
    %74 = arith.cmpi eq, %1, %73 : vector<1x256xi32>
    %75 = vector.shape_cast %74 : vector<1x256xi1> to vector<1x256xi1>
    %76 = vector.broadcast %75 : vector<1x256xi1> to vector<4x256xi1>
    %77 = arith.select %76, %72, %71 : vector<4x256xi1>, vector<4x256xf32>
    %c6 = arith.constant 6 : index
    %c0_43 = arith.constant 0 : index
    %c0_44 = arith.constant 0 : index
    %78 = vector.load %arg3[%c6, %c0_43, %c0_44] : memref<9x4x4xf32, #tpu.memory_space<vmem>>, vector<1x4x4xf32>
    %79 = vector.shape_cast %78 : vector<1x4x4xf32> to vector<4x4xf32>
    %cst_45 = arith.constant dense<0.000000e+00> : vector<4x256xf32>
    %80 = tpu.matmul %79, %77, %cst_45 {dimension_numbers = #tpu.dot_dimension_numbers<[1], [0], [0], [1], [0, 0, 1, 1], [], []>} : vector<4x4xf32>, vector<4x256xf32>, vector<4x256xf32> -> vector<4x256xf32>
    %81 = arith.addf %63, %80 : vector<4x256xf32>
    %c7 = arith.constant 7 : index
    %c0_46 = arith.constant 0 : index
    %c0_47 = arith.constant 0 : index
    %82 = vector.load %arg3[%c7, %c0_46, %c0_47] : memref<9x4x4xf32, #tpu.memory_space<vmem>>, vector<1x4x4xf32>
    %83 = vector.shape_cast %82 : vector<1x4x4xf32> to vector<4x4xf32>
    %cst_48 = arith.constant dense<0.000000e+00> : vector<4x256xf32>
    %84 = tpu.matmul %83, %70, %cst_48 {dimension_numbers = #tpu.dot_dimension_numbers<[1], [0], [0], [1], [0, 0, 1, 1], [], []>} : vector<4x4xf32>, vector<4x256xf32>, vector<4x256xf32> -> vector<4x256xf32>
    %85 = arith.addf %81, %84 : vector<4x256xf32>
    %c255_i32_49 = arith.constant 255 : i32
    %86 = tpu.dynamic_rotate %70 by %c255_i32_49 dim 1 : vector<4x256xf32>, i32 -> vector<4x256xf32>
    %c1_i32_50 = arith.constant 1 : i32
    %87 = tpu.dynamic_rotate %70 by %c1_i32_50 dim 1 : vector<4x256xf32>, i32 -> vector<4x256xf32>
    %c15_i32_51 = arith.constant 15 : i32
    %88 = vector.broadcast %c15_i32_51 : i32 to vector<1x256xi32>
    %89 = arith.cmpi eq, %1, %88 : vector<1x256xi32>
    %90 = vector.shape_cast %89 : vector<1x256xi1> to vector<1x256xi1>
    %91 = vector.broadcast %90 : vector<1x256xi1> to vector<4x256xi1>
    %92 = arith.select %91, %87, %86 : vector<4x256xi1>, vector<4x256xf32>
    %c8 = arith.constant 8 : index
    %c0_52 = arith.constant 0 : index
    %c0_53 = arith.constant 0 : index
    %93 = vector.load %arg3[%c8, %c0_52, %c0_53] : memref<9x4x4xf32, #tpu.memory_space<vmem>>, vector<1x4x4xf32>
    %94 = vector.shape_cast %93 : vector<1x4x4xf32> to vector<4x4xf32>
    %cst_54 = arith.constant dense<0.000000e+00> : vector<4x256xf32>
    %95 = tpu.matmul %94, %92, %cst_54 {dimension_numbers = #tpu.dot_dimension_numbers<[1], [0], [0], [1], [0, 0, 1, 1], [], []>} : vector<4x4xf32>, vector<4x256xf32>, vector<4x256xf32> -> vector<4x256xf32>
    %96 = arith.addf %85, %95 : vector<4x256xf32>
    %97 = vector.broadcast %2 : vector<4x1xf32> to vector<4x256xf32>
    %98 = arith.addf %96, %97 : vector<4x256xf32>
    %cst_55 = arith.constant dense<0.000000e+00> : vector<4xf32>
    %99 = vector.multi_reduction <add>, %98, %cst_55 [1] : vector<4x256xf32> to vector<4xf32>
    %100 = vector.shape_cast %99 : vector<4xf32> to vector<4x1xf32>
    %cst_56 = arith.constant 3.906250e-03 : f32
    %101 = vector.broadcast %cst_56 : f32 to vector<4x1xf32>
    %102 = arith.mulf %100, %101 : vector<4x1xf32>
    %103 = vector.broadcast %102 : vector<4x1xf32> to vector<4x256xf32>
    %104 = arith.subf %98, %103 : vector<4x256xf32>
    %105 = arith.mulf %104, %104 : vector<4x256xf32>
    %cst_57 = arith.constant dense<0.000000e+00> : vector<4xf32>
    %106 = vector.multi_reduction <add>, %105, %cst_57 [1] : vector<4x256xf32> to vector<4xf32>
    %107 = vector.shape_cast %106 : vector<4xf32> to vector<4x1xf32>
    %cst_58 = arith.constant 3.906250e-03 : f32
    %108 = vector.broadcast %cst_58 : f32 to vector<4x1xf32>
    %109 = arith.mulf %107, %108 : vector<4x1xf32>
    %cst_59 = arith.constant 9.99999974E-6 : f32
    %110 = vector.broadcast %cst_59 : f32 to vector<4x1xf32>
    %111 = arith.addf %109, %110 : vector<4x1xf32>
    %112 = math.rsqrt %111 : vector<4x1xf32>
    %113 = vector.broadcast %112 : vector<4x1xf32> to vector<4x256xf32>
    %114 = arith.mulf %104, %113 : vector<4x256xf32>
    %cst_60 = arith.constant 0.000000e+00 : f32
    %115 = vector.broadcast %cst_60 : f32 to vector<4x256xf32>
    %116 = arith.cmpf oge, %114, %115 : vector<4x256xf32>
    %cst_61 = arith.constant 0.00999999977 : f32
    %117 = vector.broadcast %cst_61 : f32 to vector<4x256xf32>
    %118 = arith.mulf %117, %114 : vector<4x256xf32>
    %119 = arith.select %116, %114, %118 : vector<4x256xi1>, vector<4x256xf32>
    %c16_i32_62 = arith.constant 16 : i32
    %120 = tpu.dynamic_rotate %119 by %c16_i32_62 dim 1 : vector<4x256xf32>, i32 -> vector<4x256xf32>
    %c240_i32_63 = arith.constant 240 : i32
    %121 = tpu.dynamic_rotate %119 by %c240_i32_63 dim 1 : vector<4x256xf32>, i32 -> vector<4x256xf32>
    %c0_i32_64 = arith.constant 0 : i32
    %122 = vector.broadcast %c0_i32_64 : i32 to vector<1x256xi32>
    %123 = arith.cmpi eq, %0, %122 : vector<1x256xi32>
    %124 = vector.shape_cast %123 : vector<1x256xi1> to vector<1x256xi1>
    %125 = vector.broadcast %124 : vector<1x256xi1> to vector<4x256xi1>
    %126 = arith.select %125, %121, %120 : vector<4x256xi1>, vector<4x256xf32>
    %c1_i32_65 = arith.constant 1 : i32
    %127 = tpu.dynamic_rotate %126 by %c1_i32_65 dim 1 : vector<4x256xf32>, i32 -> vector<4x256xf32>
    %c255_i32_66 = arith.constant 255 : i32
    %128 = tpu.dynamic_rotate %126 by %c255_i32_66 dim 1 : vector<4x256xf32>, i32 -> vector<4x256xf32>
    %c0_i32_67 = arith.constant 0 : i32
    %129 = vector.broadcast %c0_i32_67 : i32 to vector<1x256xi32>
    %130 = arith.cmpi eq, %1, %129 : vector<1x256xi32>
    %131 = vector.shape_cast %130 : vector<1x256xi1> to vector<1x256xi1>
    %132 = vector.broadcast %131 : vector<1x256xi1> to vector<4x256xi1>
    %133 = arith.select %132, %128, %127 : vector<4x256xi1>, vector<4x256xf32>
    %c0_68 = arith.constant 0 : index
    %c0_69 = arith.constant 0 : index
    %c0_70 = arith.constant 0 : index
    %134 = vector.load %arg5[%c0_68, %c0_69, %c0_70] : memref<9x4x4xf32, #tpu.memory_space<vmem>>, vector<1x4x4xf32>
    %135 = vector.shape_cast %134 : vector<1x4x4xf32> to vector<4x4xf32>
    %cst_71 = arith.constant dense<0.000000e+00> : vector<4x256xf32>
    %136 = tpu.matmul %135, %133, %cst_71 {dimension_numbers = #tpu.dot_dimension_numbers<[1], [0], [0], [1], [0, 0, 1, 1], [], []>} : vector<4x4xf32>, vector<4x256xf32>, vector<4x256xf32> -> vector<4x256xf32>
    %c1_72 = arith.constant 1 : index
    %c0_73 = arith.constant 0 : index
    %c0_74 = arith.constant 0 : index
    %137 = vector.load %arg5[%c1_72, %c0_73, %c0_74] : memref<9x4x4xf32, #tpu.memory_space<vmem>>, vector<1x4x4xf32>
    %138 = vector.shape_cast %137 : vector<1x4x4xf32> to vector<4x4xf32>
    %cst_75 = arith.constant dense<0.000000e+00> : vector<4x256xf32>
    %139 = tpu.matmul %138, %126, %cst_75 {dimension_numbers = #tpu.dot_dimension_numbers<[1], [0], [0], [1], [0, 0, 1, 1], [], []>} : vector<4x4xf32>, vector<4x256xf32>, vector<4x256xf32> -> vector<4x256xf32>
    %140 = arith.addf %136, %139 : vector<4x256xf32>
    %c255_i32_76 = arith.constant 255 : i32
    %141 = tpu.dynamic_rotate %126 by %c255_i32_76 dim 1 : vector<4x256xf32>, i32 -> vector<4x256xf32>
    %c1_i32_77 = arith.constant 1 : i32
    %142 = tpu.dynamic_rotate %126 by %c1_i32_77 dim 1 : vector<4x256xf32>, i32 -> vector<4x256xf32>
    %c15_i32_78 = arith.constant 15 : i32
    %143 = vector.broadcast %c15_i32_78 : i32 to vector<1x256xi32>
    %144 = arith.cmpi eq, %1, %143 : vector<1x256xi32>
    %145 = vector.shape_cast %144 : vector<1x256xi1> to vector<1x256xi1>
    %146 = vector.broadcast %145 : vector<1x256xi1> to vector<4x256xi1>
    %147 = arith.select %146, %142, %141 : vector<4x256xi1>, vector<4x256xf32>
    %c2_79 = arith.constant 2 : index
    %c0_80 = arith.constant 0 : index
    %c0_81 = arith.constant 0 : index
    %148 = vector.load %arg5[%c2_79, %c0_80, %c0_81] : memref<9x4x4xf32, #tpu.memory_space<vmem>>, vector<1x4x4xf32>
    %149 = vector.shape_cast %148 : vector<1x4x4xf32> to vector<4x4xf32>
    %cst_82 = arith.constant dense<0.000000e+00> : vector<4x256xf32>
    %150 = tpu.matmul %149, %147, %cst_82 {dimension_numbers = #tpu.dot_dimension_numbers<[1], [0], [0], [1], [0, 0, 1, 1], [], []>} : vector<4x4xf32>, vector<4x256xf32>, vector<4x256xf32> -> vector<4x256xf32>
    %151 = arith.addf %140, %150 : vector<4x256xf32>
    %c1_i32_83 = arith.constant 1 : i32
    %152 = tpu.dynamic_rotate %119 by %c1_i32_83 dim 1 : vector<4x256xf32>, i32 -> vector<4x256xf32>
    %c255_i32_84 = arith.constant 255 : i32
    %153 = tpu.dynamic_rotate %119 by %c255_i32_84 dim 1 : vector<4x256xf32>, i32 -> vector<4x256xf32>
    %c0_i32_85 = arith.constant 0 : i32
    %154 = vector.broadcast %c0_i32_85 : i32 to vector<1x256xi32>
    %155 = arith.cmpi eq, %1, %154 : vector<1x256xi32>
    %156 = vector.shape_cast %155 : vector<1x256xi1> to vector<1x256xi1>
    %157 = vector.broadcast %156 : vector<1x256xi1> to vector<4x256xi1>
    %158 = arith.select %157, %153, %152 : vector<4x256xi1>, vector<4x256xf32>
    %c3_86 = arith.constant 3 : index
    %c0_87 = arith.constant 0 : index
    %c0_88 = arith.constant 0 : index
    %159 = vector.load %arg5[%c3_86, %c0_87, %c0_88] : memref<9x4x4xf32, #tpu.memory_space<vmem>>, vector<1x4x4xf32>
    %160 = vector.shape_cast %159 : vector<1x4x4xf32> to vector<4x4xf32>
    %cst_89 = arith.constant dense<0.000000e+00> : vector<4x256xf32>
    %161 = tpu.matmul %160, %158, %cst_89 {dimension_numbers = #tpu.dot_dimension_numbers<[1], [0], [0], [1], [0, 0, 1, 1], [], []>} : vector<4x4xf32>, vector<4x256xf32>, vector<4x256xf32> -> vector<4x256xf32>
    %162 = arith.addf %151, %161 : vector<4x256xf32>
    %c4_90 = arith.constant 4 : index
    %c0_91 = arith.constant 0 : index
    %c0_92 = arith.constant 0 : index
    %163 = vector.load %arg5[%c4_90, %c0_91, %c0_92] : memref<9x4x4xf32, #tpu.memory_space<vmem>>, vector<1x4x4xf32>
    %164 = vector.shape_cast %163 : vector<1x4x4xf32> to vector<4x4xf32>
    %cst_93 = arith.constant dense<0.000000e+00> : vector<4x256xf32>
    %165 = tpu.matmul %164, %119, %cst_93 {dimension_numbers = #tpu.dot_dimension_numbers<[1], [0], [0], [1], [0, 0, 1, 1], [], []>} : vector<4x4xf32>, vector<4x256xf32>, vector<4x256xf32> -> vector<4x256xf32>
    %166 = arith.addf %162, %165 : vector<4x256xf32>
    %c255_i32_94 = arith.constant 255 : i32
    %167 = tpu.dynamic_rotate %119 by %c255_i32_94 dim 1 : vector<4x256xf32>, i32 -> vector<4x256xf32>
    %c1_i32_95 = arith.constant 1 : i32
    %168 = tpu.dynamic_rotate %119 by %c1_i32_95 dim 1 : vector<4x256xf32>, i32 -> vector<4x256xf32>
    %c15_i32_96 = arith.constant 15 : i32
    %169 = vector.broadcast %c15_i32_96 : i32 to vector<1x256xi32>
    %170 = arith.cmpi eq, %1, %169 : vector<1x256xi32>
    %171 = vector.shape_cast %170 : vector<1x256xi1> to vector<1x256xi1>
    %172 = vector.broadcast %171 : vector<1x256xi1> to vector<4x256xi1>
    %173 = arith.select %172, %168, %167 : vector<4x256xi1>, vector<4x256xf32>
    %c5_97 = arith.constant 5 : index
    %c0_98 = arith.constant 0 : index
    %c0_99 = arith.constant 0 : index
    %174 = vector.load %arg5[%c5_97, %c0_98, %c0_99] : memref<9x4x4xf32, #tpu.memory_space<vmem>>, vector<1x4x4xf32>
    %175 = vector.shape_cast %174 : vector<1x4x4xf32> to vector<4x4xf32>
    %cst_100 = arith.constant dense<0.000000e+00> : vector<4x256xf32>
    %176 = tpu.matmul %175, %173, %cst_100 {dimension_numbers = #tpu.dot_dimension_numbers<[1], [0], [0], [1], [0, 0, 1, 1], [], []>} : vector<4x4xf32>, vector<4x256xf32>, vector<4x256xf32> -> vector<4x256xf32>
    %177 = arith.addf %166, %176 : vector<4x256xf32>
    %c240_i32_101 = arith.constant 240 : i32
    %178 = tpu.dynamic_rotate %119 by %c240_i32_101 dim 1 : vector<4x256xf32>, i32 -> vector<4x256xf32>
    %c16_i32_102 = arith.constant 16 : i32
    %179 = tpu.dynamic_rotate %119 by %c16_i32_102 dim 1 : vector<4x256xf32>, i32 -> vector<4x256xf32>
    %c15_i32_103 = arith.constant 15 : i32
    %180 = vector.broadcast %c15_i32_103 : i32 to vector<1x256xi32>
    %181 = arith.cmpi eq, %0, %180 : vector<1x256xi32>
    %182 = vector.shape_cast %181 : vector<1x256xi1> to vector<1x256xi1>
    %183 = vector.broadcast %182 : vector<1x256xi1> to vector<4x256xi1>
    %184 = arith.select %183, %179, %178 : vector<4x256xi1>, vector<4x256xf32>
    %c1_i32_104 = arith.constant 1 : i32
    %185 = tpu.dynamic_rotate %184 by %c1_i32_104 dim 1 : vector<4x256xf32>, i32 -> vector<4x256xf32>
    %c255_i32_105 = arith.constant 255 : i32
    %186 = tpu.dynamic_rotate %184 by %c255_i32_105 dim 1 : vector<4x256xf32>, i32 -> vector<4x256xf32>
    %c0_i32_106 = arith.constant 0 : i32
    %187 = vector.broadcast %c0_i32_106 : i32 to vector<1x256xi32>
    %188 = arith.cmpi eq, %1, %187 : vector<1x256xi32>
    %189 = vector.shape_cast %188 : vector<1x256xi1> to vector<1x256xi1>
    %190 = vector.broadcast %189 : vector<1x256xi1> to vector<4x256xi1>
    %191 = arith.select %190, %186, %185 : vector<4x256xi1>, vector<4x256xf32>
    %c6_107 = arith.constant 6 : index
    %c0_108 = arith.constant 0 : index
    %c0_109 = arith.constant 0 : index
    %192 = vector.load %arg5[%c6_107, %c0_108, %c0_109] : memref<9x4x4xf32, #tpu.memory_space<vmem>>, vector<1x4x4xf32>
    %193 = vector.shape_cast %192 : vector<1x4x4xf32> to vector<4x4xf32>
    %cst_110 = arith.constant dense<0.000000e+00> : vector<4x256xf32>
    %194 = tpu.matmul %193, %191, %cst_110 {dimension_numbers = #tpu.dot_dimension_numbers<[1], [0], [0], [1], [0, 0, 1, 1], [], []>} : vector<4x4xf32>, vector<4x256xf32>, vector<4x256xf32> -> vector<4x256xf32>
    %195 = arith.addf %177, %194 : vector<4x256xf32>
    %c7_111 = arith.constant 7 : index
    %c0_112 = arith.constant 0 : index
    %c0_113 = arith.constant 0 : index
    %196 = vector.load %arg5[%c7_111, %c0_112, %c0_113] : memref<9x4x4xf32, #tpu.memory_space<vmem>>, vector<1x4x4xf32>
    %197 = vector.shape_cast %196 : vector<1x4x4xf32> to vector<4x4xf32>
    %cst_114 = arith.constant dense<0.000000e+00> : vector<4x256xf32>
    %198 = tpu.matmul %197, %184, %cst_114 {dimension_numbers = #tpu.dot_dimension_numbers<[1], [0], [0], [1], [0, 0, 1, 1], [], []>} : vector<4x4xf32>, vector<4x256xf32>, vector<4x256xf32> -> vector<4x256xf32>
    %199 = arith.addf %195, %198 : vector<4x256xf32>
    %c255_i32_115 = arith.constant 255 : i32
    %200 = tpu.dynamic_rotate %184 by %c255_i32_115 dim 1 : vector<4x256xf32>, i32 -> vector<4x256xf32>
    %c1_i32_116 = arith.constant 1 : i32
    %201 = tpu.dynamic_rotate %184 by %c1_i32_116 dim 1 : vector<4x256xf32>, i32 -> vector<4x256xf32>
    %c15_i32_117 = arith.constant 15 : i32
    %202 = vector.broadcast %c15_i32_117 : i32 to vector<1x256xi32>
    %203 = arith.cmpi eq, %1, %202 : vector<1x256xi32>
    %204 = vector.shape_cast %203 : vector<1x256xi1> to vector<1x256xi1>
    %205 = vector.broadcast %204 : vector<1x256xi1> to vector<4x256xi1>
    %206 = arith.select %205, %201, %200 : vector<4x256xi1>, vector<4x256xf32>
    %c8_118 = arith.constant 8 : index
    %c0_119 = arith.constant 0 : index
    %c0_120 = arith.constant 0 : index
    %207 = vector.load %arg5[%c8_118, %c0_119, %c0_120] : memref<9x4x4xf32, #tpu.memory_space<vmem>>, vector<1x4x4xf32>
    %208 = vector.shape_cast %207 : vector<1x4x4xf32> to vector<4x4xf32>
    %cst_121 = arith.constant dense<0.000000e+00> : vector<4x256xf32>
    %209 = tpu.matmul %208, %206, %cst_121 {dimension_numbers = #tpu.dot_dimension_numbers<[1], [0], [0], [1], [0, 0, 1, 1], [], []>} : vector<4x4xf32>, vector<4x256xf32>, vector<4x256xf32> -> vector<4x256xf32>
    %210 = arith.addf %199, %209 : vector<4x256xf32>
    %211 = vector.broadcast %3 : vector<4x1xf32> to vector<4x256xf32>
    %212 = arith.addf %210, %211 : vector<4x256xf32>
    %cst_122 = arith.constant dense<0.000000e+00> : vector<4xf32>
    %213 = vector.multi_reduction <add>, %212, %cst_122 [1] : vector<4x256xf32> to vector<4xf32>
    %214 = vector.shape_cast %213 : vector<4xf32> to vector<4x1xf32>
    %cst_123 = arith.constant 3.906250e-03 : f32
    %215 = vector.broadcast %cst_123 : f32 to vector<4x1xf32>
    %216 = arith.mulf %214, %215 : vector<4x1xf32>
    %217 = vector.broadcast %216 : vector<4x1xf32> to vector<4x256xf32>
    %218 = arith.subf %212, %217 : vector<4x256xf32>
    %219 = arith.mulf %218, %218 : vector<4x256xf32>
    %cst_124 = arith.constant dense<0.000000e+00> : vector<4xf32>
    %220 = vector.multi_reduction <add>, %219, %cst_124 [1] : vector<4x256xf32> to vector<4xf32>
    %221 = vector.shape_cast %220 : vector<4xf32> to vector<4x1xf32>
    %cst_125 = arith.constant 3.906250e-03 : f32
    %222 = vector.broadcast %cst_125 : f32 to vector<4x1xf32>
    %223 = arith.mulf %221, %222 : vector<4x1xf32>
    %cst_126 = arith.constant 9.99999974E-6 : f32
    %224 = vector.broadcast %cst_126 : f32 to vector<4x1xf32>
    %225 = arith.addf %223, %224 : vector<4x1xf32>
    %226 = math.rsqrt %225 : vector<4x1xf32>
    %227 = vector.broadcast %226 : vector<4x1xf32> to vector<4x256xf32>
    %228 = arith.mulf %218, %227 : vector<4x256xf32>
    %c0_127 = arith.constant 0 : index
    %c0_128 = arith.constant 0 : index
    %c0_129 = arith.constant 0 : index
    %229 = vector.load %arg2[%c0_127, %c0_128, %c0_129] : memref<2x4x256xf32, #tpu.memory_space<vmem>>, vector<1x4x256xf32>
    %230 = vector.shape_cast %229 : vector<1x4x256xf32> to vector<4x256xf32>
    %231 = arith.addf %230, %228 : vector<4x256xf32>
    %c0_130 = arith.constant 0 : index
    %c0_131 = arith.constant 0 : index
    %c0_132 = arith.constant 0 : index
    %232 = vector.load %arg7[%c0_130, %c0_131, %c0_132] : memref<2x4x256xf32, #tpu.memory_space<vmem>>, vector<1x4x256xf32>
    %233 = vector.shape_cast %232 : vector<1x4x256xf32> to vector<4x256xf32>
    %234 = vector.shape_cast %231 : vector<4x256xf32> to vector<1x4x256xf32>
    tpu.vector_store %arg7[%c0_130, %c0_131, %c0_132], %234 {strides = array<i32>} : memref<2x4x256xf32, #tpu.memory_space<vmem>>, vector<1x4x256xf32>,
    %c1_133 = arith.constant 1 : index
    %c0_134 = arith.constant 0 : index
    %c0_135 = arith.constant 0 : index
    %235 = vector.load %arg2[%c1_133, %c0_134, %c0_135] : memref<2x4x256xf32, #tpu.memory_space<vmem>>, vector<1x4x256xf32>
    %236 = vector.shape_cast %235 : vector<1x4x256xf32> to vector<4x256xf32>
    %c16_i32_136 = arith.constant 16 : i32
    %237 = tpu.dynamic_rotate %236 by %c16_i32_136 dim 1 : vector<4x256xf32>, i32 -> vector<4x256xf32>
    %c240_i32_137 = arith.constant 240 : i32
    %238 = tpu.dynamic_rotate %236 by %c240_i32_137 dim 1 : vector<4x256xf32>, i32 -> vector<4x256xf32>
    %c0_i32_138 = arith.constant 0 : i32
    %239 = vector.broadcast %c0_i32_138 : i32 to vector<1x256xi32>
    %240 = arith.cmpi eq, %0, %239 : vector<1x256xi32>
    %241 = vector.shape_cast %240 : vector<1x256xi1> to vector<1x256xi1>
    %242 = vector.broadcast %241 : vector<1x256xi1> to vector<4x256xi1>
    %243 = arith.select %242, %238, %237 : vector<4x256xi1>, vector<4x256xf32>
    %c1_i32_139 = arith.constant 1 : i32
    %244 = tpu.dynamic_rotate %243 by %c1_i32_139 dim 1 : vector<4x256xf32>, i32 -> vector<4x256xf32>
    %c255_i32_140 = arith.constant 255 : i32
    %245 = tpu.dynamic_rotate %243 by %c255_i32_140 dim 1 : vector<4x256xf32>, i32 -> vector<4x256xf32>
    %c0_i32_141 = arith.constant 0 : i32
    %246 = vector.broadcast %c0_i32_141 : i32 to vector<1x256xi32>
    %247 = arith.cmpi eq, %1, %246 : vector<1x256xi32>
    %248 = vector.shape_cast %247 : vector<1x256xi1> to vector<1x256xi1>
    %249 = vector.broadcast %248 : vector<1x256xi1> to vector<4x256xi1>
    %250 = arith.select %249, %245, %244 : vector<4x256xi1>, vector<4x256xf32>
    %c0_142 = arith.constant 0 : index
    %c0_143 = arith.constant 0 : index
    %c0_144 = arith.constant 0 : index
    %251 = vector.load %arg3[%c0_142, %c0_143, %c0_144] : memref<9x4x4xf32, #tpu.memory_space<vmem>>, vector<1x4x4xf32>
    %252 = vector.shape_cast %251 : vector<1x4x4xf32> to vector<4x4xf32>
    %cst_145 = arith.constant dense<0.000000e+00> : vector<4x256xf32>
    %253 = tpu.matmul %252, %250, %cst_145 {dimension_numbers = #tpu.dot_dimension_numbers<[1], [0], [0], [1], [0, 0, 1, 1], [], []>} : vector<4x4xf32>, vector<4x256xf32>, vector<4x256xf32> -> vector<4x256xf32>
    %c1_146 = arith.constant 1 : index
    %c0_147 = arith.constant 0 : index
    %c0_148 = arith.constant 0 : index
    %254 = vector.load %arg3[%c1_146, %c0_147, %c0_148] : memref<9x4x4xf32, #tpu.memory_space<vmem>>, vector<1x4x4xf32>
    %255 = vector.shape_cast %254 : vector<1x4x4xf32> to vector<4x4xf32>
    %cst_149 = arith.constant dense<0.000000e+00> : vector<4x256xf32>
    %256 = tpu.matmul %255, %243, %cst_149 {dimension_numbers = #tpu.dot_dimension_numbers<[1], [0], [0], [1], [0, 0, 1, 1], [], []>} : vector<4x4xf32>, vector<4x256xf32>, vector<4x256xf32> -> vector<4x256xf32>
    %257 = arith.addf %253, %256 : vector<4x256xf32>
    %c255_i32_150 = arith.constant 255 : i32
    %258 = tpu.dynamic_rotate %243 by %c255_i32_150 dim 1 : vector<4x256xf32>, i32 -> vector<4x256xf32>
    %c1_i32_151 = arith.constant 1 : i32
    %259 = tpu.dynamic_rotate %243 by %c1_i32_151 dim 1 : vector<4x256xf32>, i32 -> vector<4x256xf32>
    %c15_i32_152 = arith.constant 15 : i32
    %260 = vector.broadcast %c15_i32_152 : i32 to vector<1x256xi32>
    %261 = arith.cmpi eq, %1, %260 : vector<1x256xi32>
    %262 = vector.shape_cast %261 : vector<1x256xi1> to vector<1x256xi1>
    %263 = vector.broadcast %262 : vector<1x256xi1> to vector<4x256xi1>
    %264 = arith.select %263, %259, %258 : vector<4x256xi1>, vector<4x256xf32>
    %c2_153 = arith.constant 2 : index
    %c0_154 = arith.constant 0 : index
    %c0_155 = arith.constant 0 : index
    %265 = vector.load %arg3[%c2_153, %c0_154, %c0_155] : memref<9x4x4xf32, #tpu.memory_space<vmem>>, vector<1x4x4xf32>
    %266 = vector.shape_cast %265 : vector<1x4x4xf32> to vector<4x4xf32>
    %cst_156 = arith.constant dense<0.000000e+00> : vector<4x256xf32>
    %267 = tpu.matmul %266, %264, %cst_156 {dimension_numbers = #tpu.dot_dimension_numbers<[1], [0], [0], [1], [0, 0, 1, 1], [], []>} : vector<4x4xf32>, vector<4x256xf32>, vector<4x256xf32> -> vector<4x256xf32>
    %268 = arith.addf %257, %267 : vector<4x256xf32>
    %c1_i32_157 = arith.constant 1 : i32
    %269 = tpu.dynamic_rotate %236 by %c1_i32_157 dim 1 : vector<4x256xf32>, i32 -> vector<4x256xf32>
    %c255_i32_158 = arith.constant 255 : i32
    %270 = tpu.dynamic_rotate %236 by %c255_i32_158 dim 1 : vector<4x256xf32>, i32 -> vector<4x256xf32>
    %c0_i32_159 = arith.constant 0 : i32
    %271 = vector.broadcast %c0_i32_159 : i32 to vector<1x256xi32>
    %272 = arith.cmpi eq, %1, %271 : vector<1x256xi32>
    %273 = vector.shape_cast %272 : vector<1x256xi1> to vector<1x256xi1>
    %274 = vector.broadcast %273 : vector<1x256xi1> to vector<4x256xi1>
    %275 = arith.select %274, %270, %269 : vector<4x256xi1>, vector<4x256xf32>
    %c3_160 = arith.constant 3 : index
    %c0_161 = arith.constant 0 : index
    %c0_162 = arith.constant 0 : index
    %276 = vector.load %arg3[%c3_160, %c0_161, %c0_162] : memref<9x4x4xf32, #tpu.memory_space<vmem>>, vector<1x4x4xf32>
    %277 = vector.shape_cast %276 : vector<1x4x4xf32> to vector<4x4xf32>
    %cst_163 = arith.constant dense<0.000000e+00> : vector<4x256xf32>
    %278 = tpu.matmul %277, %275, %cst_163 {dimension_numbers = #tpu.dot_dimension_numbers<[1], [0], [0], [1], [0, 0, 1, 1], [], []>} : vector<4x4xf32>, vector<4x256xf32>, vector<4x256xf32> -> vector<4x256xf32>
    %279 = arith.addf %268, %278 : vector<4x256xf32>
    %c4_164 = arith.constant 4 : index
    %c0_165 = arith.constant 0 : index
    %c0_166 = arith.constant 0 : index
    %280 = vector.load %arg3[%c4_164, %c0_165, %c0_166] : memref<9x4x4xf32, #tpu.memory_space<vmem>>, vector<1x4x4xf32>
    %281 = vector.shape_cast %280 : vector<1x4x4xf32> to vector<4x4xf32>
    %cst_167 = arith.constant dense<0.000000e+00> : vector<4x256xf32>
    %282 = tpu.matmul %281, %236, %cst_167 {dimension_numbers = #tpu.dot_dimension_numbers<[1], [0], [0], [1], [0, 0, 1, 1], [], []>} : vector<4x4xf32>, vector<4x256xf32>, vector<4x256xf32> -> vector<4x256xf32>
    %283 = arith.addf %279, %282 : vector<4x256xf32>
    %c255_i32_168 = arith.constant 255 : i32
    %284 = tpu.dynamic_rotate %236 by %c255_i32_168 dim 1 : vector<4x256xf32>, i32 -> vector<4x256xf32>
    %c1_i32_169 = arith.constant 1 : i32
    %285 = tpu.dynamic_rotate %236 by %c1_i32_169 dim 1 : vector<4x256xf32>, i32 -> vector<4x256xf32>
    %c15_i32_170 = arith.constant 15 : i32
    %286 = vector.broadcast %c15_i32_170 : i32 to vector<1x256xi32>
    %287 = arith.cmpi eq, %1, %286 : vector<1x256xi32>
    %288 = vector.shape_cast %287 : vector<1x256xi1> to vector<1x256xi1>
    %289 = vector.broadcast %288 : vector<1x256xi1> to vector<4x256xi1>
    %290 = arith.select %289, %285, %284 : vector<4x256xi1>, vector<4x256xf32>
    %c5_171 = arith.constant 5 : index
    %c0_172 = arith.constant 0 : index
    %c0_173 = arith.constant 0 : index
    %291 = vector.load %arg3[%c5_171, %c0_172, %c0_173] : memref<9x4x4xf32, #tpu.memory_space<vmem>>, vector<1x4x4xf32>
    %292 = vector.shape_cast %291 : vector<1x4x4xf32> to vector<4x4xf32>
    %cst_174 = arith.constant dense<0.000000e+00> : vector<4x256xf32>
    %293 = tpu.matmul %292, %290, %cst_174 {dimension_numbers = #tpu.dot_dimension_numbers<[1], [0], [0], [1], [0, 0, 1, 1], [], []>} : vector<4x4xf32>, vector<4x256xf32>, vector<4x256xf32> -> vector<4x256xf32>
    %294 = arith.addf %283, %293 : vector<4x256xf32>
    %c240_i32_175 = arith.constant 240 : i32
    %295 = tpu.dynamic_rotate %236 by %c240_i32_175 dim 1 : vector<4x256xf32>, i32 -> vector<4x256xf32>
    %c16_i32_176 = arith.constant 16 : i32
    %296 = tpu.dynamic_rotate %236 by %c16_i32_176 dim 1 : vector<4x256xf32>, i32 -> vector<4x256xf32>
    %c15_i32_177 = arith.constant 15 : i32
    %297 = vector.broadcast %c15_i32_177 : i32 to vector<1x256xi32>
    %298 = arith.cmpi eq, %0, %297 : vector<1x256xi32>
    %299 = vector.shape_cast %298 : vector<1x256xi1> to vector<1x256xi1>
    %300 = vector.broadcast %299 : vector<1x256xi1> to vector<4x256xi1>
    %301 = arith.select %300, %296, %295 : vector<4x256xi1>, vector<4x256xf32>
    %c1_i32_178 = arith.constant 1 : i32
    %302 = tpu.dynamic_rotate %301 by %c1_i32_178 dim 1 : vector<4x256xf32>, i32 -> vector<4x256xf32>
    %c255_i32_179 = arith.constant 255 : i32
    %303 = tpu.dynamic_rotate %301 by %c255_i32_179 dim 1 : vector<4x256xf32>, i32 -> vector<4x256xf32>
    %c0_i32_180 = arith.constant 0 : i32
    %304 = vector.broadcast %c0_i32_180 : i32 to vector<1x256xi32>
    %305 = arith.cmpi eq, %1, %304 : vector<1x256xi32>
    %306 = vector.shape_cast %305 : vector<1x256xi1> to vector<1x256xi1>
    %307 = vector.broadcast %306 : vector<1x256xi1> to vector<4x256xi1>
    %308 = arith.select %307, %303, %302 : vector<4x256xi1>, vector<4x256xf32>
    %c6_181 = arith.constant 6 : index
    %c0_182 = arith.constant 0 : index
    %c0_183 = arith.constant 0 : index
    %309 = vector.load %arg3[%c6_181, %c0_182, %c0_183] : memref<9x4x4xf32, #tpu.memory_space<vmem>>, vector<1x4x4xf32>
    %310 = vector.shape_cast %309 : vector<1x4x4xf32> to vector<4x4xf32>
    %cst_184 = arith.constant dense<0.000000e+00> : vector<4x256xf32>
    %311 = tpu.matmul %310, %308, %cst_184 {dimension_numbers = #tpu.dot_dimension_numbers<[1], [0], [0], [1], [0, 0, 1, 1], [], []>} : vector<4x4xf32>, vector<4x256xf32>, vector<4x256xf32> -> vector<4x256xf32>
    %312 = arith.addf %294, %311 : vector<4x256xf32>
    %c7_185 = arith.constant 7 : index
    %c0_186 = arith.constant 0 : index
    %c0_187 = arith.constant 0 : index
    %313 = vector.load %arg3[%c7_185, %c0_186, %c0_187] : memref<9x4x4xf32, #tpu.memory_space<vmem>>, vector<1x4x4xf32>
    %314 = vector.shape_cast %313 : vector<1x4x4xf32> to vector<4x4xf32>
    %cst_188 = arith.constant dense<0.000000e+00> : vector<4x256xf32>
    %315 = tpu.matmul %314, %301, %cst_188 {dimension_numbers = #tpu.dot_dimension_numbers<[1], [0], [0], [1], [0, 0, 1, 1], [], []>} : vector<4x4xf32>, vector<4x256xf32>, vector<4x256xf32> -> vector<4x256xf32>
    %316 = arith.addf %312, %315 : vector<4x256xf32>
    %c255_i32_189 = arith.constant 255 : i32
    %317 = tpu.dynamic_rotate %301 by %c255_i32_189 dim 1 : vector<4x256xf32>, i32 -> vector<4x256xf32>
    %c1_i32_190 = arith.constant 1 : i32
    %318 = tpu.dynamic_rotate %301 by %c1_i32_190 dim 1 : vector<4x256xf32>, i32 -> vector<4x256xf32>
    %c15_i32_191 = arith.constant 15 : i32
    %319 = vector.broadcast %c15_i32_191 : i32 to vector<1x256xi32>
    %320 = arith.cmpi eq, %1, %319 : vector<1x256xi32>
    %321 = vector.shape_cast %320 : vector<1x256xi1> to vector<1x256xi1>
    %322 = vector.broadcast %321 : vector<1x256xi1> to vector<4x256xi1>
    %323 = arith.select %322, %318, %317 : vector<4x256xi1>, vector<4x256xf32>
    %c8_192 = arith.constant 8 : index
    %c0_193 = arith.constant 0 : index
    %c0_194 = arith.constant 0 : index
    %324 = vector.load %arg3[%c8_192, %c0_193, %c0_194] : memref<9x4x4xf32, #tpu.memory_space<vmem>>, vector<1x4x4xf32>
    %325 = vector.shape_cast %324 : vector<1x4x4xf32> to vector<4x4xf32>
    %cst_195 = arith.constant dense<0.000000e+00> : vector<4x256xf32>
    %326 = tpu.matmul %325, %323, %cst_195 {dimension_numbers = #tpu.dot_dimension_numbers<[1], [0], [0], [1], [0, 0, 1, 1], [], []>} : vector<4x4xf32>, vector<4x256xf32>, vector<4x256xf32> -> vector<4x256xf32>
    %327 = arith.addf %316, %326 : vector<4x256xf32>
    %328 = vector.broadcast %2 : vector<4x1xf32> to vector<4x256xf32>
    %329 = arith.addf %327, %328 : vector<4x256xf32>
    %cst_196 = arith.constant dense<0.000000e+00> : vector<4xf32>
    %330 = vector.multi_reduction <add>, %329, %cst_196 [1] : vector<4x256xf32> to vector<4xf32>
    %331 = vector.shape_cast %330 : vector<4xf32> to vector<4x1xf32>
    %cst_197 = arith.constant 3.906250e-03 : f32
    %332 = vector.broadcast %cst_197 : f32 to vector<4x1xf32>
    %333 = arith.mulf %331, %332 : vector<4x1xf32>
    %334 = vector.broadcast %333 : vector<4x1xf32> to vector<4x256xf32>
    %335 = arith.subf %329, %334 : vector<4x256xf32>
    %336 = arith.mulf %335, %335 : vector<4x256xf32>
    %cst_198 = arith.constant dense<0.000000e+00> : vector<4xf32>
    %337 = vector.multi_reduction <add>, %336, %cst_198 [1] : vector<4x256xf32> to vector<4xf32>
    %338 = vector.shape_cast %337 : vector<4xf32> to vector<4x1xf32>
    %cst_199 = arith.constant 3.906250e-03 : f32
    %339 = vector.broadcast %cst_199 : f32 to vector<4x1xf32>
    %340 = arith.mulf %338, %339 : vector<4x1xf32>
    %cst_200 = arith.constant 9.99999974E-6 : f32
    %341 = vector.broadcast %cst_200 : f32 to vector<4x1xf32>
    %342 = arith.addf %340, %341 : vector<4x1xf32>
    %343 = math.rsqrt %342 : vector<4x1xf32>
    %344 = vector.broadcast %343 : vector<4x1xf32> to vector<4x256xf32>
    %345 = arith.mulf %335, %344 : vector<4x256xf32>
    %cst_201 = arith.constant 0.000000e+00 : f32
    %346 = vector.broadcast %cst_201 : f32 to vector<4x256xf32>
    %347 = arith.cmpf oge, %345, %346 : vector<4x256xf32>
    %cst_202 = arith.constant 0.00999999977 : f32
    %348 = vector.broadcast %cst_202 : f32 to vector<4x256xf32>
    %349 = arith.mulf %348, %345 : vector<4x256xf32>
    %350 = arith.select %347, %345, %349 : vector<4x256xi1>, vector<4x256xf32>
    %c16_i32_203 = arith.constant 16 : i32
    %351 = tpu.dynamic_rotate %350 by %c16_i32_203 dim 1 : vector<4x256xf32>, i32 -> vector<4x256xf32>
    %c240_i32_204 = arith.constant 240 : i32
    %352 = tpu.dynamic_rotate %350 by %c240_i32_204 dim 1 : vector<4x256xf32>, i32 -> vector<4x256xf32>
    %c0_i32_205 = arith.constant 0 : i32
    %353 = vector.broadcast %c0_i32_205 : i32 to vector<1x256xi32>
    %354 = arith.cmpi eq, %0, %353 : vector<1x256xi32>
    %355 = vector.shape_cast %354 : vector<1x256xi1> to vector<1x256xi1>
    %356 = vector.broadcast %355 : vector<1x256xi1> to vector<4x256xi1>
    %357 = arith.select %356, %352, %351 : vector<4x256xi1>, vector<4x256xf32>
    %c1_i32_206 = arith.constant 1 : i32
    %358 = tpu.dynamic_rotate %357 by %c1_i32_206 dim 1 : vector<4x256xf32>, i32 -> vector<4x256xf32>
    %c255_i32_207 = arith.constant 255 : i32
    %359 = tpu.dynamic_rotate %357 by %c255_i32_207 dim 1 : vector<4x256xf32>, i32 -> vector<4x256xf32>
    %c0_i32_208 = arith.constant 0 : i32
    %360 = vector.broadcast %c0_i32_208 : i32 to vector<1x256xi32>
    %361 = arith.cmpi eq, %1, %360 : vector<1x256xi32>
    %362 = vector.shape_cast %361 : vector<1x256xi1> to vector<1x256xi1>
    %363 = vector.broadcast %362 : vector<1x256xi1> to vector<4x256xi1>
    %364 = arith.select %363, %359, %358 : vector<4x256xi1>, vector<4x256xf32>
    %c0_209 = arith.constant 0 : index
    %c0_210 = arith.constant 0 : index
    %c0_211 = arith.constant 0 : index
    %365 = vector.load %arg5[%c0_209, %c0_210, %c0_211] : memref<9x4x4xf32, #tpu.memory_space<vmem>>, vector<1x4x4xf32>
    %366 = vector.shape_cast %365 : vector<1x4x4xf32> to vector<4x4xf32>
    %cst_212 = arith.constant dense<0.000000e+00> : vector<4x256xf32>
    %367 = tpu.matmul %366, %364, %cst_212 {dimension_numbers = #tpu.dot_dimension_numbers<[1], [0], [0], [1], [0, 0, 1, 1], [], []>} : vector<4x4xf32>, vector<4x256xf32>, vector<4x256xf32> -> vector<4x256xf32>
    %c1_213 = arith.constant 1 : index
    %c0_214 = arith.constant 0 : index
    %c0_215 = arith.constant 0 : index
    %368 = vector.load %arg5[%c1_213, %c0_214, %c0_215] : memref<9x4x4xf32, #tpu.memory_space<vmem>>, vector<1x4x4xf32>
    %369 = vector.shape_cast %368 : vector<1x4x4xf32> to vector<4x4xf32>
    %cst_216 = arith.constant dense<0.000000e+00> : vector<4x256xf32>
    %370 = tpu.matmul %369, %357, %cst_216 {dimension_numbers = #tpu.dot_dimension_numbers<[1], [0], [0], [1], [0, 0, 1, 1], [], []>} : vector<4x4xf32>, vector<4x256xf32>, vector<4x256xf32> -> vector<4x256xf32>
    %371 = arith.addf %367, %370 : vector<4x256xf32>
    %c255_i32_217 = arith.constant 255 : i32
    %372 = tpu.dynamic_rotate %357 by %c255_i32_217 dim 1 : vector<4x256xf32>, i32 -> vector<4x256xf32>
    %c1_i32_218 = arith.constant 1 : i32
    %373 = tpu.dynamic_rotate %357 by %c1_i32_218 dim 1 : vector<4x256xf32>, i32 -> vector<4x256xf32>
    %c15_i32_219 = arith.constant 15 : i32
    %374 = vector.broadcast %c15_i32_219 : i32 to vector<1x256xi32>
    %375 = arith.cmpi eq, %1, %374 : vector<1x256xi32>
    %376 = vector.shape_cast %375 : vector<1x256xi1> to vector<1x256xi1>
    %377 = vector.broadcast %376 : vector<1x256xi1> to vector<4x256xi1>
    %378 = arith.select %377, %373, %372 : vector<4x256xi1>, vector<4x256xf32>
    %c2_220 = arith.constant 2 : index
    %c0_221 = arith.constant 0 : index
    %c0_222 = arith.constant 0 : index
    %379 = vector.load %arg5[%c2_220, %c0_221, %c0_222] : memref<9x4x4xf32, #tpu.memory_space<vmem>>, vector<1x4x4xf32>
    %380 = vector.shape_cast %379 : vector<1x4x4xf32> to vector<4x4xf32>
    %cst_223 = arith.constant dense<0.000000e+00> : vector<4x256xf32>
    %381 = tpu.matmul %380, %378, %cst_223 {dimension_numbers = #tpu.dot_dimension_numbers<[1], [0], [0], [1], [0, 0, 1, 1], [], []>} : vector<4x4xf32>, vector<4x256xf32>, vector<4x256xf32> -> vector<4x256xf32>
    %382 = arith.addf %371, %381 : vector<4x256xf32>
    %c1_i32_224 = arith.constant 1 : i32
    %383 = tpu.dynamic_rotate %350 by %c1_i32_224 dim 1 : vector<4x256xf32>, i32 -> vector<4x256xf32>
    %c255_i32_225 = arith.constant 255 : i32
    %384 = tpu.dynamic_rotate %350 by %c255_i32_225 dim 1 : vector<4x256xf32>, i32 -> vector<4x256xf32>
    %c0_i32_226 = arith.constant 0 : i32
    %385 = vector.broadcast %c0_i32_226 : i32 to vector<1x256xi32>
    %386 = arith.cmpi eq, %1, %385 : vector<1x256xi32>
    %387 = vector.shape_cast %386 : vector<1x256xi1> to vector<1x256xi1>
    %388 = vector.broadcast %387 : vector<1x256xi1> to vector<4x256xi1>
    %389 = arith.select %388, %384, %383 : vector<4x256xi1>, vector<4x256xf32>
    %c3_227 = arith.constant 3 : index
    %c0_228 = arith.constant 0 : index
    %c0_229 = arith.constant 0 : index
    %390 = vector.load %arg5[%c3_227, %c0_228, %c0_229] : memref<9x4x4xf32, #tpu.memory_space<vmem>>, vector<1x4x4xf32>
    %391 = vector.shape_cast %390 : vector<1x4x4xf32> to vector<4x4xf32>
    %cst_230 = arith.constant dense<0.000000e+00> : vector<4x256xf32>
    %392 = tpu.matmul %391, %389, %cst_230 {dimension_numbers = #tpu.dot_dimension_numbers<[1], [0], [0], [1], [0, 0, 1, 1], [], []>} : vector<4x4xf32>, vector<4x256xf32>, vector<4x256xf32> -> vector<4x256xf32>
    %393 = arith.addf %382, %392 : vector<4x256xf32>
    %c4_231 = arith.constant 4 : index
    %c0_232 = arith.constant 0 : index
    %c0_233 = arith.constant 0 : index
    %394 = vector.load %arg5[%c4_231, %c0_232, %c0_233] : memref<9x4x4xf32, #tpu.memory_space<vmem>>, vector<1x4x4xf32>
    %395 = vector.shape_cast %394 : vector<1x4x4xf32> to vector<4x4xf32>
    %cst_234 = arith.constant dense<0.000000e+00> : vector<4x256xf32>
    %396 = tpu.matmul %395, %350, %cst_234 {dimension_numbers = #tpu.dot_dimension_numbers<[1], [0], [0], [1], [0, 0, 1, 1], [], []>} : vector<4x4xf32>, vector<4x256xf32>, vector<4x256xf32> -> vector<4x256xf32>
    %397 = arith.addf %393, %396 : vector<4x256xf32>
    %c255_i32_235 = arith.constant 255 : i32
    %398 = tpu.dynamic_rotate %350 by %c255_i32_235 dim 1 : vector<4x256xf32>, i32 -> vector<4x256xf32>
    %c1_i32_236 = arith.constant 1 : i32
    %399 = tpu.dynamic_rotate %350 by %c1_i32_236 dim 1 : vector<4x256xf32>, i32 -> vector<4x256xf32>
    %c15_i32_237 = arith.constant 15 : i32
    %400 = vector.broadcast %c15_i32_237 : i32 to vector<1x256xi32>
    %401 = arith.cmpi eq, %1, %400 : vector<1x256xi32>
    %402 = vector.shape_cast %401 : vector<1x256xi1> to vector<1x256xi1>
    %403 = vector.broadcast %402 : vector<1x256xi1> to vector<4x256xi1>
    %404 = arith.select %403, %399, %398 : vector<4x256xi1>, vector<4x256xf32>
    %c5_238 = arith.constant 5 : index
    %c0_239 = arith.constant 0 : index
    %c0_240 = arith.constant 0 : index
    %405 = vector.load %arg5[%c5_238, %c0_239, %c0_240] : memref<9x4x4xf32, #tpu.memory_space<vmem>>, vector<1x4x4xf32>
    %406 = vector.shape_cast %405 : vector<1x4x4xf32> to vector<4x4xf32>
    %cst_241 = arith.constant dense<0.000000e+00> : vector<4x256xf32>
    %407 = tpu.matmul %406, %404, %cst_241 {dimension_numbers = #tpu.dot_dimension_numbers<[1], [0], [0], [1], [0, 0, 1, 1], [], []>} : vector<4x4xf32>, vector<4x256xf32>, vector<4x256xf32> -> vector<4x256xf32>
    %408 = arith.addf %397, %407 : vector<4x256xf32>
    %c240_i32_242 = arith.constant 240 : i32
    %409 = tpu.dynamic_rotate %350 by %c240_i32_242 dim 1 : vector<4x256xf32>, i32 -> vector<4x256xf32>
    %c16_i32_243 = arith.constant 16 : i32
    %410 = tpu.dynamic_rotate %350 by %c16_i32_243 dim 1 : vector<4x256xf32>, i32 -> vector<4x256xf32>
    %c15_i32_244 = arith.constant 15 : i32
    %411 = vector.broadcast %c15_i32_244 : i32 to vector<1x256xi32>
    %412 = arith.cmpi eq, %0, %411 : vector<1x256xi32>
    %413 = vector.shape_cast %412 : vector<1x256xi1> to vector<1x256xi1>
    %414 = vector.broadcast %413 : vector<1x256xi1> to vector<4x256xi1>
    %415 = arith.select %414, %410, %409 : vector<4x256xi1>, vector<4x256xf32>
    %c1_i32_245 = arith.constant 1 : i32
    %416 = tpu.dynamic_rotate %415 by %c1_i32_245 dim 1 : vector<4x256xf32>, i32 -> vector<4x256xf32>
    %c255_i32_246 = arith.constant 255 : i32
    %417 = tpu.dynamic_rotate %415 by %c255_i32_246 dim 1 : vector<4x256xf32>, i32 -> vector<4x256xf32>
    %c0_i32_247 = arith.constant 0 : i32
    %418 = vector.broadcast %c0_i32_247 : i32 to vector<1x256xi32>
    %419 = arith.cmpi eq, %1, %418 : vector<1x256xi32>
    %420 = vector.shape_cast %419 : vector<1x256xi1> to vector<1x256xi1>
    %421 = vector.broadcast %420 : vector<1x256xi1> to vector<4x256xi1>
    %422 = arith.select %421, %417, %416 : vector<4x256xi1>, vector<4x256xf32>
    %c6_248 = arith.constant 6 : index
    %c0_249 = arith.constant 0 : index
    %c0_250 = arith.constant 0 : index
    %423 = vector.load %arg5[%c6_248, %c0_249, %c0_250] : memref<9x4x4xf32, #tpu.memory_space<vmem>>, vector<1x4x4xf32>
    %424 = vector.shape_cast %423 : vector<1x4x4xf32> to vector<4x4xf32>
    %cst_251 = arith.constant dense<0.000000e+00> : vector<4x256xf32>
    %425 = tpu.matmul %424, %422, %cst_251 {dimension_numbers = #tpu.dot_dimension_numbers<[1], [0], [0], [1], [0, 0, 1, 1], [], []>} : vector<4x4xf32>, vector<4x256xf32>, vector<4x256xf32> -> vector<4x256xf32>
    %426 = arith.addf %408, %425 : vector<4x256xf32>
    %c7_252 = arith.constant 7 : index
    %c0_253 = arith.constant 0 : index
    %c0_254 = arith.constant 0 : index
    %427 = vector.load %arg5[%c7_252, %c0_253, %c0_254] : memref<9x4x4xf32, #tpu.memory_space<vmem>>, vector<1x4x4xf32>
    %428 = vector.shape_cast %427 : vector<1x4x4xf32> to vector<4x4xf32>
    %cst_255 = arith.constant dense<0.000000e+00> : vector<4x256xf32>
    %429 = tpu.matmul %428, %415, %cst_255 {dimension_numbers = #tpu.dot_dimension_numbers<[1], [0], [0], [1], [0, 0, 1, 1], [], []>} : vector<4x4xf32>, vector<4x256xf32>, vector<4x256xf32> -> vector<4x256xf32>
    %430 = arith.addf %426, %429 : vector<4x256xf32>
    %c255_i32_256 = arith.constant 255 : i32
    %431 = tpu.dynamic_rotate %415 by %c255_i32_256 dim 1 : vector<4x256xf32>, i32 -> vector<4x256xf32>
    %c1_i32_257 = arith.constant 1 : i32
    %432 = tpu.dynamic_rotate %415 by %c1_i32_257 dim 1 : vector<4x256xf32>, i32 -> vector<4x256xf32>
    %c15_i32_258 = arith.constant 15 : i32
    %433 = vector.broadcast %c15_i32_258 : i32 to vector<1x256xi32>
    %434 = arith.cmpi eq, %1, %433 : vector<1x256xi32>
    %435 = vector.shape_cast %434 : vector<1x256xi1> to vector<1x256xi1>
    %436 = vector.broadcast %435 : vector<1x256xi1> to vector<4x256xi1>
    %437 = arith.select %436, %432, %431 : vector<4x256xi1>, vector<4x256xf32>
    %c8_259 = arith.constant 8 : index
    %c0_260 = arith.constant 0 : index
    %c0_261 = arith.constant 0 : index
    %438 = vector.load %arg5[%c8_259, %c0_260, %c0_261] : memref<9x4x4xf32, #tpu.memory_space<vmem>>, vector<1x4x4xf32>
    %439 = vector.shape_cast %438 : vector<1x4x4xf32> to vector<4x4xf32>
    %cst_262 = arith.constant dense<0.000000e+00> : vector<4x256xf32>
    %440 = tpu.matmul %439, %437, %cst_262 {dimension_numbers = #tpu.dot_dimension_numbers<[1], [0], [0], [1], [0, 0, 1, 1], [], []>} : vector<4x4xf32>, vector<4x256xf32>, vector<4x256xf32> -> vector<4x256xf32>
    %441 = arith.addf %430, %440 : vector<4x256xf32>
    %442 = vector.broadcast %3 : vector<4x1xf32> to vector<4x256xf32>
    %443 = arith.addf %441, %442 : vector<4x256xf32>
    %cst_263 = arith.constant dense<0.000000e+00> : vector<4xf32>
    %444 = vector.multi_reduction <add>, %443, %cst_263 [1] : vector<4x256xf32> to vector<4xf32>
    %445 = vector.shape_cast %444 : vector<4xf32> to vector<4x1xf32>
    %cst_264 = arith.constant 3.906250e-03 : f32
    %446 = vector.broadcast %cst_264 : f32 to vector<4x1xf32>
    %447 = arith.mulf %445, %446 : vector<4x1xf32>
    %448 = vector.broadcast %447 : vector<4x1xf32> to vector<4x256xf32>
    %449 = arith.subf %443, %448 : vector<4x256xf32>
    %450 = arith.mulf %449, %449 : vector<4x256xf32>
    %cst_265 = arith.constant dense<0.000000e+00> : vector<4xf32>
    %451 = vector.multi_reduction <add>, %450, %cst_265 [1] : vector<4x256xf32> to vector<4xf32>
    %452 = vector.shape_cast %451 : vector<4xf32> to vector<4x1xf32>
    %cst_266 = arith.constant 3.906250e-03 : f32
    %453 = vector.broadcast %cst_266 : f32 to vector<4x1xf32>
    %454 = arith.mulf %452, %453 : vector<4x1xf32>
    %cst_267 = arith.constant 9.99999974E-6 : f32
    %455 = vector.broadcast %cst_267 : f32 to vector<4x1xf32>
    %456 = arith.addf %454, %455 : vector<4x1xf32>
    %457 = math.rsqrt %456 : vector<4x1xf32>
    %458 = vector.broadcast %457 : vector<4x1xf32> to vector<4x256xf32>
    %459 = arith.mulf %449, %458 : vector<4x256xf32>
    %c1_268 = arith.constant 1 : index
    %c0_269 = arith.constant 0 : index
    %c0_270 = arith.constant 0 : index
    %460 = vector.load %arg2[%c1_268, %c0_269, %c0_270] : memref<2x4x256xf32, #tpu.memory_space<vmem>>, vector<1x4x256xf32>
    %461 = vector.shape_cast %460 : vector<1x4x256xf32> to vector<4x256xf32>
    %462 = arith.addf %461, %459 : vector<4x256xf32>
    %c1_271 = arith.constant 1 : index
    %c0_272 = arith.constant 0 : index
    %c0_273 = arith.constant 0 : index
    %463 = vector.load %arg7[%c1_271, %c0_272, %c0_273] : memref<2x4x256xf32, #tpu.memory_space<vmem>>, vector<1x4x256xf32>
    %464 = vector.shape_cast %463 : vector<1x4x256xf32> to vector<4x256xf32>
    %465 = vector.shape_cast %462 : vector<4x256xf32> to vector<1x4x256xf32>
    tpu.vector_store %arg7[%c1_271, %c0_272, %c0_273], %465 {strides = array<i32>} : memref<2x4x256xf32, #tpu.memory_space<vmem>>, vector<1x4x256xf32>,
    return
  }
  func.func @transform_0(%arg0: i32) -> (i32, i32) {
    %c0_i32 = arith.constant 0 : i32
    %c0_i32_0 = arith.constant 0 : i32
    %c0_i32_1 = arith.constant 0 : i32
    return %c0_i32, %c0_i32_0 : i32, i32
  }
  func.func @transform_1(%arg0: i32) -> (i32, i32, i32) {
    %c0_i32 = arith.constant 0 : i32
    %c0_i32_0 = arith.constant 0 : i32
    %c0_i32_1 = arith.constant 0 : i32
    return %arg0, %c0_i32, %c0_i32_0 : i32, i32, i32
  }
  func.func @transform_2(%arg0: i32) -> (i32, i32, i32) {
    %c0_i32 = arith.constant 0 : i32
    %c0_i32_0 = arith.constant 0 : i32
    %c0_i32_1 = arith.constant 0 : i32
    %c0_i32_2 = arith.constant 0 : i32
    return %c0_i32, %c0_i32_0, %c0_i32_1 : i32, i32, i32
  }
  func.func @transform_3(%arg0: i32) -> (i32, i32) {
    %c0_i32 = arith.constant 0 : i32
    %c0_i32_0 = arith.constant 0 : i32
    %c0_i32_1 = arith.constant 0 : i32
    return %c0_i32, %c0_i32_0 : i32, i32
  }
  func.func @transform_4(%arg0: i32) -> (i32, i32, i32) {
    %c0_i32 = arith.constant 0 : i32
    %c0_i32_0 = arith.constant 0 : i32
    %c0_i32_1 = arith.constant 0 : i32
    %c0_i32_2 = arith.constant 0 : i32
    return %c0_i32, %c0_i32_0, %c0_i32_1 : i32, i32, i32
  }
  func.func @transform_5(%arg0: i32) -> (i32, i32) {
    %c0_i32 = arith.constant 0 : i32
    %c0_i32_0 = arith.constant 0 : i32
    %c0_i32_1 = arith.constant 0 : i32
    return %c0_i32, %c0_i32_0 : i32, i32
  }
  func.func @transform_6(%arg0: i32) -> (i32, i32, i32) {
    %c0_i32 = arith.constant 0 : i32
    %c0_i32_0 = arith.constant 0 : i32
    %c0_i32_1 = arith.constant 0 : i32
    return %arg0, %c0_i32, %c0_i32_0 : i32, i32, i32
  }
}

</mosaic_0001>

<bundles_post_ra>
// kernel: tpu_custom_call.1
= control target key start
LH: loop header
LB: loop body
LE: loop exit
PB: predicated region body
PF: predicated region fallthrough
CT: control target
= control target key end

     0   :  { %v37_v1 = vlaneseq  ;;  %s3659_s23 = smov 112   ;;  %s3660_s24 = smov 16   ;;  %v3661_v5 = vmov 0   ;;  %s4496_s0 = inlined_call_operand.vmem [shape: s32[2,256], index: 0, kind: input, shape index: {}]   ;;  %s4497_s1 = inlined_call_operand.vmem [shape: f32[2,4,256], index: 1, kind: input, shape index: {}]   ;;  %s4498_s2 = inlined_call_operand.vmem [shape: f32[9,4,4], index: 2, kind: input, shape index: {}]   ;;  %s4499_s3 = inlined_call_operand.vmem [shape: f32[4,1], index: 3, kind: input, shape index: {}]   ;;  %s4500_s4 = inlined_call_operand.vmem [shape: f32[9,4,4], index: 4, kind: input, shape index: {}]   ;;  %s4501_s5 = inlined_call_operand.vmem [shape: f32[4,1], index: 5, kind: input, shape index: {}]   ;;  %s4502_s6 = inlined_call_operand.hbm [shape: f32[2,4,256], index: 6, kind: output, shape index: {}]  }
   0x1   :  { %v3706_v0 = vld [vmem:[%s4497_s1] sm:$0xff]  ;;  %3624 = vset.pattern.permute.xlu0 %v3661_v5 }
   0x2   :  { %42 = vrot.lane.b32.xlu1 %v3706_v0, %s3659_s23  ;;  %33 = vrot.lane.b32.xlu0 %v3706_v0, %s3660_s24  ;;  %v3714_v2 = vcombine.high %v3706_v0, %v3706_v0  ;;  %v3473_v3 = vld [vmem:[%s4496_s0 + $0x1] ss:$2 sm:$0x3]  ;;  %v52_v4 = vshrl.u32 %v37_v1, 7 }
   0x3   :  { %vm77_vm0 = vcmp.eq.s32.totalorder %v3473_v3, 0  ;;  %vm256_vm1 = vcmp.eq.s32.totalorder %v3473_v3, 15 }
   0x4   :  { %11 = vsyncpa [#allocation3], 0  ;;  %v3719_v6 = vsel %vm77_vm0, 1, %v3661_v5  ;;  %v3725_v7 = vsub.s32 1, %v52_v4  ;;  %v3727_v8 = vsel %vm256_vm1, 1, %v3661_v5  ;;  %v3729_v9 = vsub.s32 0, %v52_v4 }
   0x5   :  { %s3662_s27 = smov 1   ;;  %v24_v14 = vld [vmem:[%s4496_s0] ss:$2 sm:$0x3]  ;;  %v3746_v16 = vand.u32 127, %v37_v1  ;;  %v3663_v21 = vmov 0.0  }
   0x6   :  { %44 = vrot.lane.b32.xlu1 %v3714_v2, %s3659_s23  ;;  %35 = vrot.lane.b32.xlu0 %v3714_v2, %s3660_s24  ;;  %v86_v10 = vrot.slane %v3719_v6, %v3725_v7  ;;  %v265_v11 = vrot.slane %v3727_v8, %v3725_v7  ;;  %v82_v12 = vrot.slane %v3719_v6, %v3729_v9  ;;  %vm49_vm2 = vcmp.eq.s32.totalorder %v24_v14, 0  ;;  %v3474_v32 = vld [vmem:[%s4498_s2 + $0x4] sm:$0xf]  ;;  %s3664_s7 = smov 127   ;;  %v27_v40 = vld [vmem:[%s4499_s3] sm:$0xf] }
   0x7   :  { %v261_v13 = vrot.slane %v3727_v8, %v3729_v9  ;;  %v50_v15 = vsel %vm49_vm2, 1, %v3661_v5  ;;  %169 = vmatprep.mubr.f32.mxu0 %v3663_v21  ;;  %249 = vmatprep.mubr.f32.mxu1 %v3663_v21  ;;  %vm46_vm3 = vcmp.lt.s32.totalorder %v3746_v16, 112  ;;  %vm39_vm4 = vcmp.lt.s32.totalorder %v3746_v16, 16  ;;  %v91_v59 = vld [vmem:[%s4498_s2] sm:$0xf]  ;;  %s3665_s12 = smov [#allocation2]  }
   0x8   :  { %v58_v17 = vrot.slane %v50_v15, %v3725_v7  ;;  %v54_v18 = vrot.slane %v50_v15, %v3729_v9  ;;  %vm98_vm7 = vcmask 1043456   ;;  %vm620_vm8 = vcmp.eq.s32.totalorder %v24_v14, 15  ;;  %v3481_v60 = vld [vmem:[%s4498_s2 + $0x8] sm:$0xf]  ;;  %s3462_s13 = sshll.u32 %s3665_s12, 4  ;;  %s3463_s13 = int_to_ptr.vmem [resolvable:$true] %s3462_s13 }
   0x9   :  { %vm94_vm9 = vcmask 31744   ;;  %v621_v33 = vsel %vm620_vm8, 1, %v3661_v5  ;;  %vm74_vm12 = vcmp.lt.s32.totalorder %v3746_v16, 127  ;;  %vm3815_vm13 = vcmp.eq.s32.totalorder %v86_v10, 1  ;;  %s3637_s16 = scalar_lea.vmem %s3463_s13, 256  ;;  %p3642_p1 = scmp.lt.s32.totalorder %s3463_s13, %s3463_s13 }
   0xa   :  { %356 = vrot.lane.b32.xlu1 %v3714_v2, %s3662_s27  ;;  %354 = vrot.lane.b32.xlu0 %v3706_v0, %s3662_s27  ;;  %vm3754_vm5 = vcmp.eq.s32.totalorder %v58_v17, 1  ;;  %vm3758_vm6 = vcmp.eq.s32.totalorder %v54_v18, 1  ;;  %v629_v34 = vrot.slane %v621_v33, %v3725_v7  ;;  %v625_v35 = vrot.slane %v621_v33, %v3729_v9  ;;  %v3485_v7 = vld [vmem:[%s4498_s2 + $0xc] sm:$0xf]  ;;  %v3489_v9 = vld [vmem:[%s4498_s2 + $0x10] sm:$0xf]  ;;  %p3638_p0 = scmp.ne.s32.totalorder %s3463_s13, %s3637_s16  ;;  %p3643_p2 = scmp.lt.s32.totalorder %s3637_s16, %s3637_s16 }
   0xb   :  { %vm3819_vm14 = vcmp.eq.s32.totalorder %v265_v11, 1  ;;  %vm3823_vm15 = vcmp.eq.s32.totalorder %v82_v12, 1  ;;  %vm3827_vm0 = vcmp.eq.s32.totalorder %v261_v13, 1  ;;  %vm67_vm1 = vcmp.lt.s32.totalorder %v3746_v16, 1  ;;  %v3607_v16 = vld [vmem:[%s4500_s4 + $0x1c] sm:$0xf] }
   0xc   :  { %vm3789_vm10 = vcmp.eq.s32.totalorder %v629_v34, 1  ;;  %vm3795_vm11 = vcmp.eq.s32.totalorder %v625_v35, 1  ;;  %p3644_p3 = por %p3643_p2, %p3642_p1 }
   0xe   :  { %p3645_p4 = pnand %p3644_p3, %p3638_p0 }
  0x74   :  { %v43_v19 = vpop.permute.xlu1 %42  ;;  %v34_v20 = vpop.permute.xlu0 %33 }
  0x78   :  { %v45_v24 = vpop.permute.xlu1 %44  ;;  %v36_v25 = vpop.permute.xlu0 %35 }
  0x79   :  { %v47_v26 = vsel %vm46_vm3, %v43_v19, %v45_v24  ;;  %v48_v27 = vsel %vm46_vm3, %v45_v24, %v43_v19  ;;  %v40_v28 = vsel %vm39_vm4, %v34_v20, %v36_v25  ;;  %v41_v29 = vsel %vm39_vm4, %v36_v25, %v34_v20  ;;  %v3497_v24 = vld [vmem:[%s4498_s2 + $0x18] sm:$0xf]  ;;  %v3501_v25 = vld [vmem:[%s4498_s2 + $0x1c] sm:$0xf] }
  0x7a   :  { %v62_v30 = vsel %vm3754_vm5, %v48_v27, %v40_v28  ;;  %v61_v31 = vsel %vm3758_vm6, %v47_v26, %v41_v29  ;;  %v633_v38 = vsel %vm3789_vm10, %v40_v28, %v48_v27  ;;  %v3804_v39 = vsel %vm3795_vm11, %v41_v29, %v47_v26  ;;  %v3505_v28 = vld [vmem:[%s4498_s2 + $0x20] sm:$0xf] }
  0x7b   :  { %65 = vrot.lane.b32.xlu1 %v62_v30, %s3662_s27  ;;  %3475 = vmatprep.subr.msk.mxu0 %vm98_vm7, %v62_v30 }
  0x7c   :  { %63 = vrot.lane.b32.xlu0 %v61_v31, %s3662_s27  ;;  %3476 = vmatpush1.msk.msra.mxu0 %vm98_vm7, %v61_v31  ;;  %v357_v41 = vpop.permute.xlu1 %356  ;;  %v355_v42 = vpop.permute.xlu0 %354 }
  0x7d   :  { %3477 = vmatmul.mubr.msk.f32.vlgmr.msra.gmra.mxu0 %vm94_vm9, %v3474_v32  ;;  %v358_v62 = vsel %vm67_vm1, %v355_v42, %v357_v41  ;;  %v359_v1 = vsel %vm67_vm1, %v357_v41, %v355_v42 }
  0x7e   :  { %345 = vmatprep.mubr.f32.mxu0 %v3663_v21 }
  0x7f   :  { %72 = vrot.lane.b32.xlu1 %v62_v30, %s3664_s7 }
  0x80   :  { %70 = vrot.lane.b32.xlu0 %v61_v31, %s3664_s7 }
  0x83   :  { %362 = vrot.lane.b32.xlu1 %v3714_v2, %s3664_s7 }
  0x84   :  { %360 = vrot.lane.b32.xlu0 %v3706_v0, %s3664_s7 }
  0x87   :  { %636 = vrot.lane.b32.xlu1 %v633_v38, %s3662_s27 }
  0x88   :  { %634 = vrot.lane.b32.xlu0 %v3804_v39, %s3662_s27 }
  0x8b   :  { %642 = vrot.lane.b32.xlu1 %v633_v38, %s3664_s7 }
  0x8c   :  { %640 = vrot.lane.b32.xlu0 %v3804_v39, %s3664_s7 }
  0x90   :  { %904 = vperm.xlu0 %3624, %v27_v40  }
  0xed   :  { %v66_v43 = vpop.permute.xlu1 %65 }
  0xee   :  { %v64_v44 = vpop.permute.xlu0 %63 }
  0xef   :  { %v68_v51 = vsel %vm67_vm1, %v64_v44, %v66_v43  ;;  %v69_v52 = vsel %vm67_vm1, %v66_v43, %v64_v44 }
  0xf1   :  { %v73_v49 = vpop.permute.xlu1 %72 }
  0xf2   :  { %v71_v50 = vpop.permute.xlu0 %70 }
  0xf3   :  { %v75_v53 = vsel %vm74_vm12, %v71_v50, %v73_v49  ;;  %v76_v54 = vsel %vm74_vm12, %v73_v49, %v71_v50 }
  0xf4   :  { %v268_v55 = vsel %vm3827_vm0, %v69_v52, %v75_v53  ;;  %v90_v56 = vsel %vm3815_vm13, %v76_v54, %v68_v51  ;;  %v269_v57 = vsel %vm3819_vm14, %v68_v51, %v76_v54  ;;  %v89_v58 = vsel %vm3823_vm15, %v75_v53, %v69_v52 }
  0xf5   :  { %3478 = vmatprep.subr.msk.mxu1 %vm98_vm7, %v90_v56  ;;  %3482 = vmatprep.subr.msk.mxu0 %vm98_vm7, %v269_v57  ;;  %v363_v61 = vpop.permute.xlu1 %362 }
  0xf6   :  { %3479 = vmatpush1.msk.msra.mxu1 %vm98_vm7, %v89_v58  ;;  %v361_v63 = vpop.permute.xlu0 %360  ;;  %3483 = vmatpush1.msk.msra.mxu0 %vm98_vm7, %v268_v55 }
  0xf7   :  { %v364_v3 = vsel %vm74_vm12, %v361_v63, %v363_v61  ;;  %v365_v4 = vsel %vm74_vm12, %v363_v61, %v361_v63  ;;  %3480 = vmatmul.mubr.msk.f32.vlgmr.msra.gmra.mxu1 %vm94_vm9, %v91_v59  ;;  %3484 = vmatmul.mubr.msk.f32.vlgmr.msra.gmra.mxu0 %vm94_vm9, %v3481_v60 }
  0xf8   :  { %v366_v5 = vsel %vm3823_vm15, %v364_v3, %v359_v1  ;;  %v367_v6 = vsel %vm3815_vm13, %v365_v4, %v358_v62  ;;  %443 = vmatprep.mubr.f32.mxu1 %v3663_v21  ;;  %3490 = vmatprep.subr.msk.mxu0 %vm98_vm7, %v3714_v2  ;;  %v535_v11 = vsel %vm3819_vm14, %v358_v62, %v365_v4 }
  0xf9   :  { %3486 = vmatprep.subr.msk.mxu1 %vm98_vm7, %v367_v6  ;;  %v637_v8 = vpop.permute.xlu1 %636  ;;  %3491 = vmatpush1.msk.msra.mxu0 %vm98_vm7, %v3706_v0  ;;  %v534_v2 = vsel %vm3827_vm0, %v359_v1, %v364_v3  ;;  %v3493_v0 = vld [vmem:[%s4498_s2 + $0x14] sm:$0xf] }
  0xfa   :  { %3487 = vmatpush1.msk.msra.mxu1 %vm98_vm7, %v366_v5  ;;  %v635_v10 = vpop.permute.xlu0 %634  ;;  %525 = vmatprep.mubr.f32.mxu0 %v3663_v21 }
  0xfb   :  { %3488 = vmatmul.mubr.msk.f32.vlgmr.msra.gmra.mxu1 %vm94_vm9, %v3485_v7  ;;  %3494 = vmatprep.subr.msk.mxu1 %vm98_vm7, %v535_v11  ;;  %v638_v14 = vsel %vm67_vm1, %v635_v10, %v637_v8  ;;  %v639_v15 = vsel %vm67_vm1, %v637_v8, %v635_v10 }
  0xfc   :  { %3495 = vmatpush1.msk.msra.mxu1 %vm98_vm7, %v534_v2  ;;  %3492 = vmatmul.mubr.msk.f32.vlgmr.msra.gmra.mxu0 %vm94_vm9, %v3489_v9 }
  0xfd   :  { %3502 = vmatprep.subr.msk.mxu1 %vm98_vm7, %v633_v38  ;;  %v643_v12 = vpop.permute.xlu1 %642  ;;  %611 = vmatprep.mubr.f32.mxu1 %v3663_v21 }
  0xfe   :  { %v641_v13 = vpop.permute.xlu0 %640  ;;  %723 = vmatprep.mubr.f32.mxu0 %v3663_v21 }
  0xff   :  { %v644_v17 = vsel %vm74_vm12, %v641_v13, %v643_v12  ;;  %v645_v18 = vsel %vm74_vm12, %v643_v12, %v641_v13  ;;  %3496 = vmatmul.mubr.msk.f32.vlgmr.msra.gmra.mxu1 %vm94_vm9, %v3493_v0 }
 0x100   :  { %v646_v19 = vsel %vm3823_vm15, %v644_v17, %v639_v15  ;;  %3503 = vmatpush1.msk.msra.mxu1 %vm98_vm7, %v3804_v39  ;;  %v647_v20 = vsel %vm3815_vm13, %v645_v18, %v638_v14  ;;  %807 = vmatprep.mubr.f32.mxu1 %v3663_v21  ;;  %v817_v26 = vsel %vm3819_vm14, %v638_v14, %v645_v18 }
 0x101   :  { %3498 = vmatprep.subr.msk.mxu0 %vm98_vm7, %v647_v20  ;;  %v816_v27 = vsel %vm3827_vm0, %v639_v15, %v644_v17 }
 0x102   :  { %3499 = vmatpush1.msk.msra.mxu0 %vm98_vm7, %v646_v19 }
 0x103   :  { %3500 = vmatmul.mubr.msk.f32.vlgmr.msra.gmra.mxu0 %vm94_vm9, %v3497_v24  ;;  %3504 = vmatmul.mubr.msk.f32.vlgmr.msra.gmra.mxu1 %vm94_vm9, %v3501_v25 }
 0x104   :  { %3506 = vmatprep.subr.msk.mxu0 %vm98_vm7, %v817_v26  ;;  %893 = vmatprep.mubr.f32.mxu0 %v3663_v21 }
 0x105   :  { %3507 = vmatpush1.msk.msra.mxu0 %vm98_vm7, %v816_v27  ;;  %1039 = vmatprep.mubr.f32.mxu1 %v3663_v21 }
 0x107   :  { %3508 = vmatmul.mubr.msk.f32.vlgmr.msra.gmra.mxu0 %vm94_vm9, %v3505_v28 }
 0x108   :  { %1119 = vmatprep.mubr.f32.mxu0 %v3663_v21 }
 0x10b   :  { %v3939_v63 = vpop.permute.xlu0 %904 }
 0x13d   :  { %v171_v29 = vpop.f32.mrf.mxu0 }
 0x13f   :  { %v173_v30 = vpop.f32.mrf.mxu0 }
 0x1b7   :  { %v251_v31 = vpop.f32.mrf.mxu1  ;;  %v347_v32 = vpop.f32.mrf.mxu0 }
 0x1b8   :  { %v252_v33 = vadd.f32 %v251_v31, %v171_v29 }
 0x1b9   :  { %v253_v34 = vpop.f32.mrf.mxu1  ;;  %v349_v35 = vpop.f32.mrf.mxu0 }
 0x1ba   :  { %v254_v38 = vadd.f32 %v253_v34, %v173_v30  ;;  %v352_v39 = vadd.f32 %v347_v32, %v252_v33  ;;  %v3958_v34 = vld [vmem:[%s4497_s1 + $0x8] sm:$0xff] }
 0x1bb   :  { %v445_v40 = vpop.f32.mrf.mxu1 }
 0x1bc   :  { %v353_v41 = vadd.f32 %v349_v35, %v254_v38  ;;  %v450_v42 = vadd.f32 %v445_v40, %v352_v39  ;;  %v527_v43 = vpop.f32.mrf.mxu0  ;;  %v3968_v35 = vcombine.high %v3958_v34, %v3958_v34 }
 0x1bd   :  { %v447_v44 = vpop.f32.mrf.mxu1 }
 0x1be   :  { %v451_v49 = vadd.f32 %v447_v44, %v353_v41  ;;  %v532_v50 = vadd.f32 %v527_v43, %v450_v42  ;;  %v529_v51 = vpop.f32.mrf.mxu0 }
 0x1bf   :  { %v613_v52 = vpop.f32.mrf.mxu1 }
 0x1c0   :  { %v533_v53 = vadd.f32 %v529_v51, %v451_v49  ;;  %v618_v55 = vadd.f32 %v613_v52, %v532_v50 }
 0x1c1   :  { %v615_v54 = vpop.f32.mrf.mxu1 }
 0x1c2   :  { %v619_v58 = vadd.f32 %v615_v54, %v533_v53 }
 0x1c3   :  { %v725_v56 = vpop.f32.mrf.mxu0  ;;  %v809_v57 = vpop.f32.mrf.mxu1 }
 0x1c4   :  { %v730_v59 = vadd.f32 %v725_v56, %v618_v55 }
 0x1c5   :  { %v727_v60 = vpop.f32.mrf.mxu0  ;;  %v811_v1 = vpop.f32.mrf.mxu1 }
 0x1c6   :  { %v814_v61 = vadd.f32 %v809_v57, %v730_v59  ;;  %v731_v62 = vadd.f32 %v727_v60, %v619_v58 }
 0x1c7   :  { %v895_v3 = vpop.f32.mrf.mxu0 }
 0x1c8   :  { %v815_v4 = vadd.f32 %v811_v1, %v731_v62  ;;  %v900_v5 = vadd.f32 %v895_v3, %v814_v61  ;;  %v3509_v62 = vld [vmem:[%s4500_s4 + $0x4] sm:$0xf] }
 0x1c9   :  { %v897_v6 = vpop.f32.mrf.mxu0 }
 0x1ca   :  { %v901_v7 = vadd.f32 %v897_v6, %v815_v4  ;;  %v907_v8 = vadd.f32 %v3939_v63, %v900_v5 }
 0x1cc   :  { %v908_v9 = vadd.f32 %v3939_v63, %v901_v7  ;;  %v909_v10 = vsel %vm98_vm7, %v907_v8, 0.0 }
 0x1ce   :  { %v910_v11 = vsel %vm98_vm7, %v908_v9, 0.0 }
 0x1cf   :  { %v911_v2 = vadd.f32 %v910_v11, %v909_v10 }
 0x1d1   :  { %912 = vadd.xlane.f32.xlu1 %v911_v2 }
 0x25a   :  { %v913_v0 = vpop.xlane.xlu1 %912 }
 0x25b   :  { %v914_v12 = vmul.f32 0.00390625, %v913_v0 }
 0x25d   :  { %v915_v13 = vsub.f32 %v907_v8, %v914_v12  ;;  %v916_v14 = vsub.f32 %v908_v9, %v914_v12 }
 0x25f   :  { %v917_v15 = vmul.f32 %v915_v13, %v915_v13  ;;  %v918_v17 = vmul.f32 %v916_v14, %v916_v14 }
 0x261   :  { %v919_v18 = vsel %vm98_vm7, %v917_v15, 0.0  ;;  %v920_v19 = vsel %vm98_vm7, %v918_v17, 0.0 }
 0x262   :  { %v921_v20 = vadd.f32 %v920_v19, %v919_v18 }
 0x264   :  { %922 = vadd.xlane.f32.xlu0 %v921_v20 }
 0x2ed   :  { %v923_v24 = vpop.xlane.xlu0 %922 }
 0x2ee   :  { %v924_v25 = vmul.f32 0.00390625, %v923_v24 }
 0x2f0   :  { %v925_v26 = vadd.f32 1e-05, %v924_v25 }
 0x2f2   :  { %3627 = vrsqrt.f32 %v925_v26 }
 0x2ff   :  { %v3628_v27 = vpop.eup %3627 }
 0x300   :  { %v928_v28 = vmul.f32 %v3628_v27, %v916_v14  ;;  %v927_v29 = vmul.f32 %v3628_v27, %v915_v13  ;;  %v963_v27 = vld [vmem:[%s4500_s4] sm:$0xf] }
 0x302   :  { %vm930_vm2 = vcmp.ge.f32.partialorder %v928_v28, 0.0  ;;  %v932_v30 = vmul.f32 0.01, %v928_v28  ;;  %vm929_vm8 = vcmp.ge.f32.partialorder %v927_v29, 0.0  ;;  %v931_v31 = vmul.f32 0.01, %v927_v29 }
 0x304   :  { %v3947_v32 = vsel %vm930_vm2, %v928_v28, %v932_v30  ;;  %v3949_v33 = vsel %vm929_vm8, %v927_v29, %v931_v31  ;;  %v3516_v28 = vld [vmem:[%s4500_s4 + $0x8] sm:$0xf] }
 0x305   :  { %937 = vrot.lane.b32.xlu0 %v3947_v32, %s3660_s24  ;;  %935 = vrot.lane.b32.xlu1 %v3949_v33, %s3660_s24 }
 0x309   :  { %941 = vrot.lane.b32.xlu1 %v3949_v33, %s3659_s23  ;;  %1788 = vrot.lane.b32.xlu0 %v3958_v34, %s3660_s24 }
 0x30d   :  { %943 = vrot.lane.b32.xlu1 %v3947_v32, %s3659_s23  ;;  %1794 = vrot.lane.b32.xlu0 %v3958_v34, %s3659_s23 }
 0x311   :  { %1790 = vrot.lane.b32.xlu1 %v3968_v35, %s3660_s24 }
 0x315   :  { %1796 = vrot.lane.b32.xlu1 %v3968_v35, %s3659_s23 }
 0x377   :  { %v936_v38 = vpop.permute.xlu1 %935  ;;  %v938_v39 = vpop.permute.xlu0 %937 }
 0x378   :  { %v939_v43 = vsel %vm39_vm4, %v936_v38, %v938_v39  ;;  %v940_v44 = vsel %vm39_vm4, %v938_v39, %v936_v38 }
 0x37b   :  { %v942_v40 = vpop.permute.xlu1 %941  ;;  %v1789_v42 = vpop.permute.xlu0 %1788 }
 0x37f   :  { %v944_v41 = vpop.permute.xlu1 %943  ;;  %v1795_v54 = vpop.permute.xlu0 %1794 }
 0x380   :  { %v945_v49 = vsel %vm46_vm3, %v942_v40, %v944_v41  ;;  %v946_v50 = vsel %vm46_vm3, %v944_v41, %v942_v40 }
 0x381   :  { %v947_v51 = vsel %vm3758_vm6, %v945_v49, %v940_v44  ;;  %v948_v52 = vsel %vm3754_vm5, %v946_v50, %v939_v43  ;;  %v4029_v1 = vsel %vm3789_vm10, %v939_v43, %v946_v50  ;;  %v4033_v3 = vsel %vm3795_vm11, %v940_v44, %v945_v49  ;;  %v3524_v44 = vld [vmem:[%s4500_s4 + $0x10] sm:$0xf] }
 0x382   :  { %3510 = vmatprep.subr.msk.mxu1 %vm98_vm7, %v948_v52 }
 0x383   :  { %3511 = vmatpush1.msk.msra.mxu1 %vm98_vm7, %v947_v51  ;;  %v1791_v53 = vpop.permute.xlu1 %1790 }
 0x384   :  { %v1792_v56 = vsel %vm39_vm4, %v1789_v42, %v1791_v53  ;;  %v1793_v57 = vsel %vm39_vm4, %v1791_v53, %v1789_v42  ;;  %3512 = vmatmul.mubr.msk.f32.vlgmr.msra.gmra.mxu1 %vm94_vm9, %v3509_v62  ;;  %v3520_v42 = vld [vmem:[%s4500_s4 + $0xc] sm:$0xf] }
 0x385   :  { %1203 = vmatprep.mubr.f32.mxu1 %v3663_v21 }
 0x387   :  { %v1797_v55 = vpop.permute.xlu1 %1796 }
 0x388   :  { %v1798_v58 = vsel %vm46_vm3, %v1795_v54, %v1797_v55  ;;  %v1799_v59 = vsel %vm46_vm3, %v1797_v55, %v1795_v54 }
 0x389   :  { %v4000_v60 = vsel %vm3754_vm5, %v1799_v59, %v1792_v56  ;;  %v4004_v61 = vsel %vm3758_vm6, %v1798_v58, %v1793_v57  ;;  %v4057_v4 = vsel %vm3789_vm10, %v1792_v56, %v1799_v59  ;;  %v4061_v5 = vsel %vm3795_vm11, %v1793_v57, %v1798_v58  ;;  %v3528_v56 = vld [vmem:[%s4500_s4 + $0x14] sm:$0xf]  ;;  %v3532_v57 = vld [vmem:[%s4500_s4 + $0x18] sm:$0xf] }
 0x38a   :  { %1804 = vrot.lane.b32.xlu1 %v4000_v60, %s3662_s27  ;;  %1802 = vrot.lane.b32.xlu0 %v4004_v61, %s3662_s27 }
 0x38e   :  { %1214 = vrot.lane.b32.xlu1 %v3947_v32, %s3662_s27  ;;  %1212 = vrot.lane.b32.xlu0 %v3949_v33, %s3662_s27 }
 0x392   :  { %1220 = vrot.lane.b32.xlu1 %v3947_v32, %s3664_s7  ;;  %1218 = vrot.lane.b32.xlu0 %v3949_v33, %s3664_s7 }
 0x396   :  { %951 = vrot.lane.b32.xlu1 %v948_v52, %s3662_s27  ;;  %949 = vrot.lane.b32.xlu0 %v947_v51, %s3662_s27 }
 0x39a   :  { %957 = vrot.lane.b32.xlu1 %v948_v52, %s3664_s7  ;;  %955 = vrot.lane.b32.xlu0 %v947_v51, %s3664_s7 }
 0x39e   :  { %1484 = vrot.lane.b32.xlu1 %v4029_v1, %s3662_s27  ;;  %1482 = vrot.lane.b32.xlu0 %v4033_v3, %s3662_s27 }
 0x3a2   :  { %1490 = vrot.lane.b32.xlu1 %v4029_v1, %s3664_s7  ;;  %1488 = vrot.lane.b32.xlu0 %v4033_v3, %s3664_s7 }
 0x3a6   :  { %1810 = vrot.lane.b32.xlu1 %v4000_v60, %s3664_s7  ;;  %1808 = vrot.lane.b32.xlu0 %v4004_v61, %s3664_s7 }
 0x3aa   :  { %2065 = vrot.lane.b32.xlu1 %v3968_v35, %s3662_s27  ;;  %2063 = vrot.lane.b32.xlu0 %v3958_v34, %s3662_s27 }
 0x3ae   :  { %2071 = vrot.lane.b32.xlu1 %v3968_v35, %s3664_s7  ;;  %2069 = vrot.lane.b32.xlu0 %v3958_v34, %s3664_s7 }
 0x3b2   :  { %2330 = vrot.lane.b32.xlu1 %v4057_v4, %s3662_s27  ;;  %2328 = vrot.lane.b32.xlu0 %v4061_v5, %s3662_s27 }
 0x3b6   :  { %2336 = vrot.lane.b32.xlu1 %v4057_v4, %s3664_s7  ;;  %2334 = vrot.lane.b32.xlu0 %v4061_v5, %s3664_s7 }
 0x3fc   :  { %v4071_v6 = vpop.permute.xlu1 %1804  ;;  %v4073_v7 = vpop.permute.xlu0 %1802 }
 0x3fd   :  { %v1806_v62 = vsel %vm67_vm1, %v4073_v7, %v4071_v6 }
 0x400   :  { %v1215_v8 = vpop.permute.xlu1 %1214  ;;  %v1213_v9 = vpop.permute.xlu0 %1212 }
 0x401   :  { %v1216_v30 = vsel %vm67_vm1, %v1213_v9, %v1215_v8  ;;  %v1217_v39 = vsel %vm67_vm1, %v1215_v8, %v1213_v9 }
 0x404   :  { %v1221_v10 = vpop.permute.xlu1 %1220  ;;  %v1219_v11 = vpop.permute.xlu0 %1218 }
 0x405   :  { %v1223_v12 = vsel %vm74_vm12, %v1221_v10, %v1219_v11  ;;  %v1222_v29 = vsel %vm74_vm12, %v1219_v11, %v1221_v10 }
 0x406   :  { %v1225_v40 = vsel %vm3815_vm13, %v1223_v12, %v1216_v30  ;;  %v1224_v41 = vsel %vm3823_vm15, %v1222_v29, %v1217_v39  ;;  %v1395_v43 = vsel %vm3819_vm14, %v1216_v30, %v1223_v12  ;;  %v1394_v49 = vsel %vm3827_vm0, %v1217_v39, %v1222_v29  ;;  %v3560_v39 = vld [vmem:[%s4498_s2 + $0x10] sm:$0xf] }
 0x408   :  { %v952_v2 = vpop.permute.xlu1 %951  ;;  %v950_v0 = vpop.permute.xlu0 %949 }
 0x409   :  { %v953_v15 = vsel %vm67_vm1, %v950_v0, %v952_v2  ;;  %v954_v17 = vsel %vm67_vm1, %v952_v2, %v950_v0  ;;  %v3540_v2 = vld [vmem:[%s4500_s4 + $0x20] sm:$0xf] }
 0x40c   :  { %v958_v13 = vpop.permute.xlu1 %957  ;;  %v956_v14 = vpop.permute.xlu0 %955 }
 0x40d   :  { %v959_v18 = vsel %vm74_vm12, %v956_v14, %v958_v13  ;;  %v960_v19 = vsel %vm74_vm12, %v958_v13, %v956_v14  ;;  %v1807_v13 = vsel %vm67_vm1, %v4071_v6, %v4073_v7  ;;  %v3545_v6 = vld [vmem:[%s4498_s2 + $0x4] sm:$0xf]  ;;  %v1816_v7 = vld [vmem:[%s4498_s2] sm:$0xf] }
 0x40e   :  { %v961_v20 = vsel %vm3823_vm15, %v959_v18, %v954_v17  ;;  %v1126_v24 = vsel %vm3827_vm0, %v954_v17, %v959_v18  ;;  %v962_v25 = vsel %vm3815_vm13, %v960_v19, %v953_v15  ;;  %v1127_v26 = vsel %vm3819_vm14, %v953_v15, %v960_v19 }
 0x40f   :  { %3513 = vmatprep.subr.msk.mxu0 %vm98_vm7, %v962_v25  ;;  %3517 = vmatprep.subr.msk.mxu1 %vm98_vm7, %v1127_v26 }
 0x410   :  { %v1485_v31 = vpop.permute.xlu1 %1484  ;;  %3514 = vmatpush1.msk.msra.mxu0 %vm98_vm7, %v961_v20  ;;  %3518 = vmatpush1.msk.msra.mxu1 %vm98_vm7, %v1126_v24  ;;  %v1483_v38 = vpop.permute.xlu0 %1482 }
 0x411   :  { %3515 = vmatmul.mubr.msk.f32.vlgmr.msra.gmra.mxu0 %vm94_vm9, %v963_v27  ;;  %3519 = vmatmul.mubr.msk.f32.vlgmr.msra.gmra.mxu1 %vm94_vm9, %v3516_v28  ;;  %v3552_v27 = vld [vmem:[%s4498_s2 + $0x8] sm:$0xf]  ;;  %v3556_v28 = vld [vmem:[%s4498_s2 + $0xc] sm:$0xf] }
 0x412   :  { %3521 = vmatprep.subr.msk.mxu0 %vm98_vm7, %v1225_v40  ;;  %3525 = vmatprep.subr.msk.mxu1 %vm98_vm7, %v3947_v32  ;;  %v1486_v32 = vsel %vm67_vm1, %v1483_v38, %v1485_v31  ;;  %v3564_v40 = vld [vmem:[%s4498_s2 + $0x14] sm:$0xf] }
 0x413   :  { %3522 = vmatpush1.msk.msra.mxu0 %vm98_vm7, %v1224_v41  ;;  %3526 = vmatpush1.msk.msra.mxu1 %vm98_vm7, %v3949_v33  ;;  %v1487_v33 = vsel %vm67_vm1, %v1485_v31, %v1483_v38 }
 0x414   :  { %3529 = vmatprep.subr.msk.mxu0 %vm98_vm7, %v1395_v43  ;;  %v1491_v50 = vpop.permute.xlu1 %1490  ;;  %1301 = vmatprep.mubr.f32.mxu0 %v3663_v21  ;;  %v1489_v51 = vpop.permute.xlu0 %1488 }
 0x415   :  { %1385 = vmatprep.mubr.f32.mxu1 %v3663_v21  ;;  %v1492_v52 = vsel %vm74_vm12, %v1489_v51, %v1491_v50  ;;  %v1493_v53 = vsel %vm74_vm12, %v1491_v50, %v1489_v51  ;;  %3523 = vmatmul.mubr.msk.f32.vlgmr.msra.gmra.mxu0 %vm94_vm9, %v3520_v42  ;;  %v3572_v50 = vld [vmem:[%s4498_s2 + $0x1c] sm:$0xf] }
 0x416   :  { %v1494_v54 = vsel %vm3823_vm15, %v1492_v52, %v1487_v33  ;;  %3527 = vmatmul.mubr.msk.f32.vlgmr.msra.gmra.mxu1 %vm94_vm9, %v3524_v44  ;;  %3530 = vmatpush1.msk.msra.mxu0 %vm98_vm7, %v1394_v49  ;;  %v1495_v55 = vsel %vm3815_vm13, %v1493_v53, %v1486_v32  ;;  %v1665_v8 = vsel %vm3819_vm14, %v1486_v32, %v1493_v53  ;;  %v3568_v32 = vld [vmem:[%s4498_s2 + $0x18] sm:$0xf] }
 0x417   :  { %3537 = vmatprep.subr.msk.mxu0 %vm98_vm7, %v4029_v1  ;;  %3533 = vmatprep.subr.msk.mxu1 %vm98_vm7, %v1495_v55  ;;  %v1664_v10 = vsel %vm3827_vm0, %v1487_v33, %v1492_v52  ;;  %v3576_v33 = vld [vmem:[%s4498_s2 + $0x20] sm:$0xf] }
 0x418   :  { %v1811_v58 = vpop.permute.xlu1 %1810  ;;  %1471 = vmatprep.mubr.f32.mxu0 %v3663_v21  ;;  %3534 = vmatpush1.msk.msra.mxu1 %vm98_vm7, %v1494_v54  ;;  %v1809_v59 = vpop.permute.xlu0 %1808 }
 0x419   :  { %1571 = vmatprep.mubr.f32.mxu1 %v3663_v21  ;;  %v1813_v1 = vsel %vm74_vm12, %v1811_v58, %v1809_v59  ;;  %3531 = vmatmul.mubr.msk.f32.vlgmr.msra.gmra.mxu0 %vm94_vm9, %v3528_v56  ;;  %v1812_v11 = vsel %vm74_vm12, %v1809_v59, %v1811_v58 }
 0x41a   :  { %3535 = vmatmul.mubr.msk.f32.vlgmr.msra.gmra.mxu1 %vm94_vm9, %v3532_v57  ;;  %3538 = vmatpush1.msk.msra.mxu0 %vm98_vm7, %v4033_v3  ;;  %v1815_v9 = vsel %vm3815_vm13, %v1813_v1, %v1806_v62  ;;  %v3536_v3 = vld [vmem:[%s4500_s4 + $0x1c] sm:$0xf]  ;;  %v1979_v14 = vsel %vm3819_vm14, %v1806_v62, %v1813_v1  ;;  %v1978_v24 = vsel %vm3827_vm0, %v1807_v13, %v1812_v11 }
 0x41b   :  { %3541 = vmatprep.subr.msk.mxu1 %vm98_vm7, %v1665_v8  ;;  %3546 = vmatprep.subr.msk.mxu0 %vm98_vm7, %v4000_v60  ;;  %v1814_v60 = vsel %vm3823_vm15, %v1812_v11, %v1807_v13 }
 0x41c   :  { %3542 = vmatpush1.msk.msra.mxu1 %vm98_vm7, %v1664_v10  ;;  %v2066_v0 = vpop.permute.xlu1 %2065  ;;  %1655 = vmatprep.mubr.f32.mxu0 %v3663_v21  ;;  %v2064_v12 = vpop.permute.xlu0 %2063 }
 0x41d   :  { %3549 = vmatprep.subr.msk.mxu1 %vm98_vm7, %v1815_v9  ;;  %1741 = vmatprep.mubr.f32.mxu1 %v3663_v21  ;;  %v2068_v18 = vsel %vm67_vm1, %v2066_v0, %v2064_v12 }
 0x41e   :  { %3539 = vmatmul.mubr.msk.f32.vlgmr.msra.gmra.mxu0 %vm94_vm9, %v3536_v3  ;;  %3543 = vmatmul.mubr.msk.f32.vlgmr.msra.gmra.mxu1 %vm94_vm9, %v3540_v2 }
 0x41f   :  { %3547 = vmatpush1.msk.msra.mxu0 %vm98_vm7, %v4004_v61  ;;  %3550 = vmatpush1.msk.msra.mxu1 %vm98_vm7, %v1814_v60  ;;  %v2067_v61 = vsel %vm67_vm1, %v2064_v12, %v2066_v0 }
 0x420   :  { %3553 = vmatprep.subr.msk.mxu0 %vm98_vm7, %v1979_v14  ;;  %v2072_v15 = vpop.permute.xlu1 %2071  ;;  %1891 = vmatprep.mubr.f32.mxu0 %v3663_v21  ;;  %v2070_v17 = vpop.permute.xlu0 %2069 }
 0x421   :  { %1971 = vmatprep.mubr.f32.mxu1 %v3663_v21  ;;  %v2073_v19 = vsel %vm74_vm12, %v2070_v17, %v2072_v15  ;;  %v2074_v20 = vsel %vm74_vm12, %v2072_v15, %v2070_v17 }
 0x422   :  { %v2075_v25 = vsel %vm3823_vm15, %v2073_v19, %v2068_v18  ;;  %3548 = vmatmul.mubr.msk.f32.vlgmr.msra.gmra.mxu0 %vm94_vm9, %v3545_v6  ;;  %3551 = vmatmul.mubr.msk.f32.vlgmr.msra.gmra.mxu1 %vm94_vm9, %v1816_v7  ;;  %v2076_v26 = vsel %vm3815_vm13, %v2074_v20, %v2067_v61  ;;  %v2242_v31 = vsel %vm3819_vm14, %v2067_v61, %v2074_v20 }
 0x423   :  { %3554 = vmatpush1.msk.msra.mxu0 %vm98_vm7, %v1978_v24  ;;  %3557 = vmatprep.subr.msk.mxu1 %vm98_vm7, %v2076_v26  ;;  %v2241_v38 = vsel %vm3827_vm0, %v2068_v18, %v2073_v19 }
 0x424   :  { %v2331_v29 = vpop.permute.xlu1 %2330  ;;  %2054 = vmatprep.mubr.f32.mxu0 %v3663_v21  ;;  %3558 = vmatpush1.msk.msra.mxu1 %vm98_vm7, %v2075_v25  ;;  %v2329_v30 = vpop.permute.xlu0 %2328 }
 0x425   :  { %2151 = vmatprep.mubr.f32.mxu1 %v3663_v21  ;;  %3565 = vmatprep.subr.msk.mxu1 %vm98_vm7, %v2242_v31  ;;  %v2332_v41 = vsel %vm67_vm1, %v2329_v30, %v2331_v29 }
 0x426   :  { %3555 = vmatmul.mubr.msk.f32.vlgmr.msra.gmra.mxu0 %vm94_vm9, %v3552_v27  ;;  %3559 = vmatmul.mubr.msk.f32.vlgmr.msra.gmra.mxu1 %vm94_vm9, %v3556_v28 }
 0x427   :  { %3566 = vmatpush1.msk.msra.mxu1 %vm98_vm7, %v2241_v38  ;;  %3561 = vmatprep.subr.msk.mxu0 %vm98_vm7, %v3968_v35  ;;  %v2333_v35 = vsel %vm67_vm1, %v2331_v29, %v2329_v30 }
 0x428   :  { %3573 = vmatprep.subr.msk.mxu1 %vm98_vm7, %v4057_v4  ;;  %v2337_v42 = vpop.permute.xlu1 %2336  ;;  %3562 = vmatpush1.msk.msra.mxu0 %vm98_vm7, %v3958_v34  ;;  %v2335_v43 = vpop.permute.xlu0 %2334 }
 0x429   :  { %2232 = vmatprep.mubr.f32.mxu0 %v3663_v21  ;;  %2317 = vmatprep.mubr.f32.mxu1 %v3663_v21  ;;  %v2338_v44 = vsel %vm74_vm12, %v2335_v43, %v2337_v42  ;;  %v2339_v49 = vsel %vm74_vm12, %v2337_v42, %v2335_v43 }
 0x42a   :  { %v2340_v4 = vsel %vm3823_vm15, %v2338_v44, %v2333_v35  ;;  %3563 = vmatmul.mubr.msk.f32.vlgmr.msra.gmra.mxu0 %vm94_vm9, %v3560_v39  ;;  %3567 = vmatmul.mubr.msk.f32.vlgmr.msra.gmra.mxu1 %vm94_vm9, %v3564_v40  ;;  %v2341_v34 = vsel %vm3815_vm13, %v2339_v49, %v2332_v41  ;;  %v2509_v51 = vsel %vm3819_vm14, %v2332_v41, %v2339_v49 }
 0x42b   :  { %3574 = vmatpush1.msk.msra.mxu1 %vm98_vm7, %v4061_v5  ;;  %3569 = vmatprep.subr.msk.mxu0 %vm98_vm7, %v2341_v34  ;;  %v2508_v5 = vsel %vm3827_vm0, %v2333_v35, %v2338_v44 }
 0x42c   :  { %3570 = vmatpush1.msk.msra.mxu0 %vm98_vm7, %v2340_v4  ;;  %2416 = vmatprep.mubr.f32.mxu0 %v3663_v21 }
 0x42d   :  { %2499 = vmatprep.mubr.f32.mxu1 %v3663_v21  ;;  %3577 = vmatprep.subr.msk.mxu0 %vm98_vm7, %v2509_v51 }
 0x42e   :  { %3571 = vmatmul.mubr.msk.f32.vlgmr.msra.gmra.mxu0 %vm94_vm9, %v3568_v32  ;;  %3575 = vmatmul.mubr.msk.f32.vlgmr.msra.gmra.mxu1 %vm94_vm9, %v3572_v50 }
 0x42f   :  { %3578 = vmatpush1.msk.msra.mxu0 %vm98_vm7, %v2508_v5  ;;  %2584 = vmatprep.mubr.f32.mxu0 %v3663_v21 }
 0x430   :  { %2724 = vmatprep.mubr.f32.mxu1 %v3663_v21 }
 0x432   :  { %3579 = vmatmul.mubr.msk.f32.vlgmr.msra.gmra.mxu0 %vm94_vm9, %v3576_v33 }
 0x433   :  { %2804 = vmatprep.mubr.f32.mxu0 %v3663_v21 }
 0x444   :  { %v1041_v52 = vpop.f32.mrf.mxu1 }
 0x446   :  { %v1043_v53 = vpop.f32.mrf.mxu1 }
 0x4d1   :  { %v1121_v54 = vpop.f32.mrf.mxu0  ;;  %v1205_v55 = vpop.f32.mrf.mxu1 }
 0x4d2   :  { %v1122_v56 = vadd.f32 %v1121_v54, %v1041_v52 }
 0x4d3   :  { %v1123_v57 = vpop.f32.mrf.mxu0  ;;  %v1207_v58 = vpop.f32.mrf.mxu1 }
 0x4d4   :  { %v1210_v59 = vadd.f32 %v1205_v55, %v1122_v56  ;;  %v1124_v62 = vadd.f32 %v1123_v57, %v1043_v53 }
 0x4d5   :  { %v1303_v1 = vpop.f32.mrf.mxu0 }
 0x4d6   :  { %v1211_v8 = vadd.f32 %v1207_v58, %v1124_v62  ;;  %v1308_v9 = vadd.f32 %v1303_v1, %v1210_v59  ;;  %v1387_v10 = vpop.f32.mrf.mxu1 }
 0x4d7   :  { %v1305_v11 = vpop.f32.mrf.mxu0 }
 0x4d8   :  { %v1392_v3 = vadd.f32 %v1387_v10, %v1308_v9  ;;  %v1309_v2 = vadd.f32 %v1305_v11, %v1211_v8  ;;  %v1389_v0 = vpop.f32.mrf.mxu1 }
 0x4d9   :  { %v1473_v12 = vpop.f32.mrf.mxu0 }
 0x4da   :  { %v1393_v13 = vadd.f32 %v1389_v0, %v1309_v2  ;;  %v1478_v60 = vadd.f32 %v1473_v12, %v1392_v3  ;;  %v1573_v14 = vpop.f32.mrf.mxu1 }
 0x4db   :  { %v1475_v6 = vpop.f32.mrf.mxu0 }
 0x4dc   :  { %v1578_v7 = vadd.f32 %v1573_v14, %v1478_v60  ;;  %v1479_v15 = vadd.f32 %v1475_v6, %v1393_v13  ;;  %v1575_v17 = vpop.f32.mrf.mxu1 }
 0x4de   :  { %v1579_v61 = vadd.f32 %v1575_v17, %v1479_v15  ;;  %v1657_v18 = vpop.f32.mrf.mxu0  ;;  %v1743_v19 = vpop.f32.mrf.mxu1 }
 0x4df   :  { %v1662_v20 = vadd.f32 %v1657_v18, %v1578_v7 }
 0x4e0   :  { %v1659_v24 = vpop.f32.mrf.mxu0  ;;  %v1745_v25 = vpop.f32.mrf.mxu1 }
 0x4e1   :  { %v4304_v26 = vadd.f32 %v1743_v19, %v1662_v20  ;;  %v1663_v27 = vadd.f32 %v1659_v24, %v1579_v61 }
 0x4e2   :  { %v1893_v28 = vpop.f32.mrf.mxu0  ;;  %v1973_v29 = vpop.f32.mrf.mxu1 }
 0x4e3   :  { %v4306_v30 = vadd.f32 %v1745_v25, %v1663_v27  ;;  %v1974_v39 = vadd.f32 %v1973_v29, %v1893_v28 }
 0x4e4   :  { %v1895_v31 = vpop.f32.mrf.mxu0  ;;  %v1975_v38 = vpop.f32.mrf.mxu1 }
 0x4e5   :  { %v1976_v42 = vadd.f32 %v1975_v38, %v1895_v31 }
 0x4e6   :  { %v2056_v40 = vpop.f32.mrf.mxu0  ;;  %v2153_v41 = vpop.f32.mrf.mxu1 }
 0x4e7   :  { %v2061_v43 = vadd.f32 %v2056_v40, %v1974_v39 }
 0x4e8   :  { %v2058_v35 = vpop.f32.mrf.mxu0  ;;  %v2155_v44 = vpop.f32.mrf.mxu1 }
 0x4e9   :  { %v2158_v49 = vadd.f32 %v2153_v41, %v2061_v43  ;;  %v2062_v4 = vadd.f32 %v2058_v35, %v1976_v42 }
 0x4ea   :  { %v2234_v34 = vpop.f32.mrf.mxu0  ;;  %v2319_v32 = vpop.f32.mrf.mxu1 }
 0x4eb   :  { %v2159_v50 = vadd.f32 %v2155_v44, %v2062_v4  ;;  %v2239_v51 = vadd.f32 %v2234_v34, %v2158_v49 }
 0x4ec   :  { %v2236_v5 = vpop.f32.mrf.mxu0  ;;  %v2321_v33 = vpop.f32.mrf.mxu1 }
 0x4ed   :  { %v2324_v52 = vadd.f32 %v2319_v32, %v2239_v51  ;;  %v2240_v53 = vadd.f32 %v2236_v5, %v2159_v50  ;;  %v3580_v51 = vld [vmem:[%s4500_s4 + $0x4] sm:$0xf]  ;;  %v28_v5 = vld [vmem:[%s4501_s5] sm:$0xf] }
 0x4ee   :  { %v2418_v54 = vpop.f32.mrf.mxu0  ;;  %v2501_v55 = vpop.f32.mrf.mxu1 }
 0x4ef   :  { %v2325_v56 = vadd.f32 %v2321_v33, %v2240_v53  ;;  %v2423_v57 = vadd.f32 %v2418_v54, %v2324_v52 }
 0x4f0   :  { %v2420_v58 = vpop.f32.mrf.mxu0  ;;  %v2503_v1 = vpop.f32.mrf.mxu1 }
 0x4f1   :  { %v2506_v59 = vadd.f32 %v2501_v55, %v2423_v57  ;;  %v2424_v62 = vadd.f32 %v2420_v58, %v2325_v56 }
 0x4f2   :  { %v2586_v8 = vpop.f32.mrf.mxu0 }
 0x4f3   :  { %v2507_v9 = vadd.f32 %v2503_v1, %v2424_v62  ;;  %v2591_v10 = vadd.f32 %v2586_v8, %v2506_v59 }
 0x4f4   :  { %v2588_v11 = vpop.f32.mrf.mxu0 }
 0x4f5   :  { %v2593_v3 = vadd.f32 %v2591_v10, %v3939_v63  ;;  %v2592_v2 = vadd.f32 %v2588_v11, %v2507_v9  ;;  %v2649_v9 = vld [vmem:[%s4500_s4] sm:$0xf]  ;;  %v3587_v11 = vld [vmem:[%s4500_s4 + $0x8] sm:$0xf] }
 0x4f7   :  { %v2594_v0 = vadd.f32 %v2592_v2, %v3939_v63  ;;  %v2595_v12 = vsel %vm98_vm7, %v2593_v3, 0.0 }
 0x4f9   :  { %v2596_v13 = vsel %vm98_vm7, %v2594_v0, 0.0 }
 0x4fa   :  { %v2597_v60 = vadd.f32 %v2596_v13, %v2595_v12 }
 0x4fc   :  { %2598 = vadd.xlane.f32.xlu0 %v2597_v60 }
 0x585   :  { %v2599_v14 = vpop.xlane.xlu0 %2598 }
 0x586   :  { %v2600_v6 = vmul.f32 0.00390625, %v2599_v14 }
 0x588   :  { %v2601_v7 = vsub.f32 %v2593_v3, %v2600_v6  ;;  %v2602_v15 = vsub.f32 %v2594_v0, %v2600_v6  ;;  %v3591_v6 = vld [vmem:[%s4500_s4 + $0xc] sm:$0xf] }
 0x58a   :  { %v2603_v17 = vmul.f32 %v2601_v7, %v2601_v7  ;;  %v2604_v61 = vmul.f32 %v2602_v15, %v2602_v15 }
 0x58c   :  { %v2605_v18 = vsel %vm98_vm7, %v2603_v17, 0.0  ;;  %v2606_v19 = vsel %vm98_vm7, %v2604_v61, 0.0 }
 0x58d   :  { %v2607_v20 = vadd.f32 %v2606_v19, %v2605_v18  ;;  %v3599_v19 = vld [vmem:[%s4500_s4 + $0x14] sm:$0xf] }
 0x58f   :  { %2608 = vadd.xlane.f32.xlu1 %v2607_v20 }
 0x618   :  { %v2609_v24 = vpop.xlane.xlu1 %2608 }
 0x619   :  { %v2610_v63 = vmul.f32 0.00390625, %v2609_v24 }
 0x61b   :  { %v2611_v25 = vadd.f32 1e-05, %v2610_v63 }
 0x61d   :  { %3629 = vrsqrt.f32 %v2611_v25 }
 0x62a   :  { %v3630_v27 = vpop.eup %3629 }
 0x62b   :  { %v2614_v28 = vmul.f32 %v3630_v27, %v2602_v15  ;;  %v2613_v29 = vmul.f32 %v3630_v27, %v2601_v7  ;;  %v3595_v15 = vld [vmem:[%s4500_s4 + $0x10] sm:$0xf] }
 0x62d   :  { %vm2616_vm2 = vcmp.ge.f32.partialorder %v2614_v28, 0.0  ;;  %v2618_v31 = vmul.f32 0.01, %v2614_v28  ;;  %vm2615_vm8 = vcmp.ge.f32.partialorder %v2613_v29, 0.0  ;;  %v2617_v38 = vmul.f32 0.01, %v2613_v29 }
 0x62f   :  { %v4314_v39 = vsel %vm2616_vm2, %v2614_v28, %v2618_v31  ;;  %v4316_v40 = vsel %vm2615_vm8, %v2613_v29, %v2617_v38  ;;  %v3603_v38 = vld [vmem:[%s4500_s4 + $0x18] sm:$0xf] }
 0x630   :  { %2623 = vrot.lane.b32.xlu1 %v4314_v39, %s3660_s24  ;;  %2621 = vrot.lane.b32.xlu0 %v4316_v40, %s3660_s24 }
 0x634   :  { %2629 = vrot.lane.b32.xlu1 %v4314_v39, %s3659_s23  ;;  %2627 = vrot.lane.b32.xlu0 %v4316_v40, %s3659_s23 }
 0x638   :  { %2898 = vrot.lane.b32.xlu1 %v4314_v39, %s3662_s27  ;;  %2896 = vrot.lane.b32.xlu0 %v4316_v40, %s3662_s27 }
 0x6a2   :  { %v2624_v41 = vpop.permute.xlu1 %2623  ;;  %v2622_v42 = vpop.permute.xlu0 %2621 }
 0x6a3   :  { %v2625_v44 = vsel %vm39_vm4, %v2622_v42, %v2624_v41  ;;  %v2626_v49 = vsel %vm39_vm4, %v2624_v41, %v2622_v42 }
 0x6a6   :  { %v2630_v43 = vpop.permute.xlu1 %2629  ;;  %v2628_v35 = vpop.permute.xlu0 %2627 }
 0x6a7   :  { %v2631_v4 = vsel %vm46_vm3, %v2628_v35, %v2630_v43  ;;  %v2632_v34 = vsel %vm46_vm3, %v2630_v43, %v2628_v35 }
 0x6a8   :  { %v2634_v32 = vsel %vm3754_vm5, %v2632_v34, %v2625_v44  ;;  %v2633_v50 = vsel %vm3758_vm6, %v2631_v4, %v2626_v49  ;;  %v3162_v22 = vsel %vm3789_vm10, %v2625_v44, %v2632_v34  ;;  %v4362_v23 = vsel %vm3795_vm11, %v2626_v49, %v2631_v4 }
 0x6a9   :  { %2637 = vrot.lane.b32.xlu1 %v2634_v32, %s3662_s27  ;;  %3581 = vmatprep.subr.msk.mxu1 %vm98_vm7, %v2634_v32 }
 0x6aa   :  { %2635 = vrot.lane.b32.xlu0 %v2633_v50, %s3662_s27  ;;  %3582 = vmatpush1.msk.msra.mxu1 %vm98_vm7, %v2633_v50  ;;  %v2899_v36 = vpop.permute.xlu1 %2898  ;;  %v2897_v33 = vpop.permute.xlu0 %2896 }
 0x6ab   :  { %3583 = vmatmul.mubr.msk.f32.vlgmr.msra.gmra.mxu1 %vm94_vm9, %v3580_v51  ;;  %v2900_v3 = vsel %vm67_vm1, %v2897_v33, %v2899_v36  ;;  %v2901_v0 = vsel %vm67_vm1, %v2899_v36, %v2897_v33 }
 0x6ac   :  { %2887 = vmatprep.mubr.f32.mxu1 %v3663_v21 }
 0x6ad   :  { %2643 = vrot.lane.b32.xlu1 %v2634_v32, %s3664_s7 }
 0x6ae   :  { %2641 = vrot.lane.b32.xlu0 %v2633_v50, %s3664_s7 }
 0x6b1   :  { %2904 = vrot.lane.b32.xlu1 %v4314_v39, %s3664_s7 }
 0x6b2   :  { %2902 = vrot.lane.b32.xlu0 %v4316_v40, %s3664_s7 }
 0x6b5   :  { %3165 = vrot.lane.b32.xlu1 %v3162_v22, %s3662_s27 }
 0x6b6   :  { %3163 = vrot.lane.b32.xlu0 %v4362_v23, %s3662_s27 }
 0x6b9   :  { %3171 = vrot.lane.b32.xlu1 %v3162_v22, %s3664_s7 }
 0x6ba   :  { %3169 = vrot.lane.b32.xlu0 %v4362_v23, %s3664_s7 }
 0x6be   :  { %1752 = vperm.xlu0 %3624, %v28_v5  }
 0x71b   :  { %v2638_v52 = vpop.permute.xlu1 %2637 }
 0x71c   :  { %v2636_v53 = vpop.permute.xlu0 %2635 }
 0x71d   :  { %v2639_v55 = vsel %vm67_vm1, %v2636_v53, %v2638_v52  ;;  %v2640_v56 = vsel %vm67_vm1, %v2638_v52, %v2636_v53 }
 0x71f   :  { %v2644_v37 = vpop.permute.xlu1 %2643 }
 0x720   :  { %v2642_v54 = vpop.permute.xlu0 %2641 }
 0x721   :  { %v2645_v57 = vsel %vm74_vm12, %v2642_v54, %v2644_v37  ;;  %v2646_v58 = vsel %vm74_vm12, %v2644_v37, %v2642_v54 }
 0x722   :  { %v2647_v59 = vsel %vm3823_vm15, %v2645_v57, %v2640_v56  ;;  %v2811_v62 = vsel %vm3827_vm0, %v2640_v56, %v2645_v57  ;;  %v2648_v1 = vsel %vm3815_vm13, %v2646_v58, %v2639_v55  ;;  %v2812_v8 = vsel %vm3819_vm14, %v2639_v55, %v2646_v58 }
 0x723   :  { %3584 = vmatprep.subr.msk.mxu0 %vm98_vm7, %v2648_v1  ;;  %3588 = vmatprep.subr.msk.mxu1 %vm98_vm7, %v2812_v8  ;;  %v2905_v10 = vpop.permute.xlu1 %2904 }
 0x724   :  { %3585 = vmatpush1.msk.msra.mxu0 %vm98_vm7, %v2647_v59  ;;  %3589 = vmatpush1.msk.msra.mxu1 %vm98_vm7, %v2811_v62  ;;  %v2903_v2 = vpop.permute.xlu0 %2902 }
 0x725   :  { %v2906_v12 = vsel %vm74_vm12, %v2903_v2, %v2905_v10  ;;  %v2907_v13 = vsel %vm74_vm12, %v2905_v10, %v2903_v2  ;;  %3586 = vmatmul.mubr.msk.f32.vlgmr.msra.gmra.mxu0 %vm94_vm9, %v2649_v9  ;;  %3596 = vmatprep.subr.msk.mxu1 %vm98_vm7, %v4314_v39  ;;  %v3611_v39 = vld [vmem:[%s4500_s4 + $0x20] sm:$0xf] }
 0x726   :  { %v2908_v60 = vsel %vm3823_vm15, %v2906_v12, %v2901_v0  ;;  %3590 = vmatmul.mubr.msk.f32.vlgmr.msra.gmra.mxu1 %vm94_vm9, %v3587_v11  ;;  %v2909_v14 = vsel %vm3815_vm13, %v2907_v13, %v2900_v3  ;;  %2984 = vmatprep.mubr.f32.mxu0 %v3663_v21  ;;  %v3077_v61 = vsel %vm3819_vm14, %v2900_v3, %v2907_v13 }
 0x727   :  { %3597 = vmatpush1.msk.msra.mxu1 %vm98_vm7, %v4316_v40  ;;  %3592 = vmatprep.subr.msk.mxu0 %vm98_vm7, %v2909_v14  ;;  %v3166_v7 = vpop.permute.xlu1 %3165  ;;  %v3076_v18 = vsel %vm3827_vm0, %v2901_v0, %v2906_v12 }
 0x728   :  { %3593 = vmatpush1.msk.msra.mxu0 %vm98_vm7, %v2908_v60  ;;  %v3164_v17 = vpop.permute.xlu0 %3163  ;;  %3067 = vmatprep.mubr.f32.mxu1 %v3663_v21 }
 0x729   :  { %3594 = vmatmul.mubr.msk.f32.vlgmr.msra.gmra.mxu0 %vm94_vm9, %v3591_v6  ;;  %3600 = vmatprep.subr.msk.mxu0 %vm98_vm7, %v3077_v61  ;;  %v3167_v63 = vsel %vm67_vm1, %v3164_v17, %v3166_v7  ;;  %v3168_v25 = vsel %vm67_vm1, %v3166_v7, %v3164_v17 }
 0x72a   :  { %3601 = vmatpush1.msk.msra.mxu0 %vm98_vm7, %v3076_v18  ;;  %3598 = vmatmul.mubr.msk.f32.vlgmr.msra.gmra.mxu1 %vm94_vm9, %v3595_v15 }
 0x72b   :  { %3608 = vmatprep.subr.msk.mxu0 %vm98_vm7, %v3162_v22  ;;  %v3172_v20 = vpop.permute.xlu1 %3171  ;;  %3152 = vmatprep.mubr.f32.mxu0 %v3663_v21 }
 0x72c   :  { %v3170_v24 = vpop.permute.xlu0 %3169  ;;  %3251 = vmatprep.mubr.f32.mxu1 %v3663_v21 }
 0x72d   :  { %v3173_v27 = vsel %vm74_vm12, %v3170_v24, %v3172_v20  ;;  %v3174_v28 = vsel %vm74_vm12, %v3172_v20, %v3170_v24  ;;  %3602 = vmatmul.mubr.msk.f32.vlgmr.msra.gmra.mxu0 %vm94_vm9, %v3599_v19 }
 0x72e   :  { %v3175_v29 = vsel %vm3823_vm15, %v3173_v27, %v3168_v25  ;;  %3609 = vmatpush1.msk.msra.mxu0 %vm98_vm7, %v4362_v23  ;;  %v3176_v31 = vsel %vm3815_vm13, %v3174_v28, %v3167_v63  ;;  %3334 = vmatprep.mubr.f32.mxu0 %v3663_v21  ;;  %v3344_v47 = vsel %vm3819_vm14, %v3167_v63, %v3174_v28 }
 0x72f   :  { %3604 = vmatprep.subr.msk.mxu1 %vm98_vm7, %v3176_v31  ;;  %v3343_v45 = vsel %vm3827_vm0, %v3168_v25, %v3173_v27 }
 0x730   :  { %3605 = vmatpush1.msk.msra.mxu1 %vm98_vm7, %v3175_v29 }
 0x731   :  { %3606 = vmatmul.mubr.msk.f32.vlgmr.msra.gmra.mxu1 %vm94_vm9, %v3603_v38  ;;  %3612 = vmatprep.subr.msk.mxu1 %vm98_vm7, %v3344_v47 }
 0x732   :  { %3613 = vmatpush1.msk.msra.mxu1 %vm98_vm7, %v3343_v45  ;;  %3610 = vmatmul.mubr.msk.f32.vlgmr.msra.gmra.mxu0 %vm94_vm9, %v3607_v16 }
 0x733   :  { %3419 = vmatprep.mubr.f32.mxu1 %v3663_v21 }
 0x735   :  { %3614 = vmatmul.mubr.msk.f32.vlgmr.msra.gmra.mxu1 %vm94_vm9, %v3611_v39 }
 0x739   :  { %v1753_v46 = vpop.permute.xlu0 %1752 }
 0x73a   :  { %v1755_v48 = vadd.f32 %v1753_v46, %v4304_v26  ;;  %v1756_v40 = vadd.f32 %v1753_v46, %v4306_v30 }
 0x73c   :  { %v1757_v41 = vsel %vm98_vm7, %v1755_v48, 0.0  ;;  %v1758_v42 = vsel %vm98_vm7, %v1756_v40, 0.0 }
 0x73d   :  { %v1759_v43 = vadd.f32 %v1758_v42, %v1757_v41 }
 0x73f   :  { %1760 = vadd.xlane.f32.xlu1 %v1759_v43 }
 0x76b   :  { %v2726_v35 = vpop.f32.mrf.mxu1 }
 0x76d   :  { %v2728_v44 = vpop.f32.mrf.mxu1 }
 0x7c8   :  { %v1761_v54 = vpop.xlane.xlu1 %1760 }
 0x7c9   :  { %v1762_v58 = vmul.f32 0.00390625, %v1761_v54 }
 0x7cb   :  { %v1763_v2 = vsub.f32 %v1755_v48, %v1762_v58  ;;  %v1764_v0 = vsub.f32 %v1756_v40, %v1762_v58 }
 0x7cd   :  { %v1765_v15 = vmul.f32 %v1763_v2, %v1763_v2  ;;  %v1766_v17 = vmul.f32 %v1764_v0, %v1764_v0 }
 0x7cf   :  { %v1767_v20 = vsel %vm98_vm7, %v1765_v15, 0.0  ;;  %v1768_v24 = vsel %vm98_vm7, %v1766_v17, 0.0 }
 0x7d0   :  { %v1769_v63 = vadd.f32 %v1768_v24, %v1767_v20 }
 0x7e5   :  { %v2806_v49 = vpop.f32.mrf.mxu0 }
 0x7e6   :  { %v2807_v4 = vadd.f32 %v2806_v49, %v2726_v35  ;;  %v2889_v34 = vpop.f32.mrf.mxu1  ;;  %v3635_v35 = vld [vmem:[%s4497_s1] sm:$0xff] }
 0x7e7   :  { %v2808_v32 = vpop.f32.mrf.mxu0 }
 0x7e8   :  { %v2809_v21 = vadd.f32 %v2808_v32, %v2728_v44  ;;  %v2894_v50 = vadd.f32 %v2889_v34, %v2807_v4  ;;  %v2891_v51 = vpop.f32.mrf.mxu1 }
 0x7e9   :  { %v2986_v22 = vpop.f32.mrf.mxu0 }
 0x7ea   :  { %v2895_v23 = vadd.f32 %v2891_v51, %v2809_v21  ;;  %v2991_v26 = vadd.f32 %v2986_v22, %v2894_v50  ;;  %v3069_v5 = vpop.f32.mrf.mxu1  ;;  %v3636_v22 = vld [vmem:[%s4497_s1 + $0x8] sm:$0xff] }
 0x7eb   :  { %v2988_v30 = vpop.f32.mrf.mxu0 }
 0x7ec   :  { %v2992_v36 = vadd.f32 %v2988_v30, %v2895_v23  ;;  %v3074_v33 = vadd.f32 %v3069_v5, %v2991_v26  ;;  %v3071_v52 = vpop.f32.mrf.mxu1 }
 0x7ed   :  { %v3154_v53 = vpop.f32.mrf.mxu0 }
 0x7ee   :  { %v3075_v37 = vadd.f32 %v3071_v52, %v2992_v36  ;;  %v3159_v56 = vadd.f32 %v3154_v53, %v3074_v33 }
 0x7ef   :  { %v3156_v55 = vpop.f32.mrf.mxu0 }
 0x7f0   :  { %v3160_v59 = vadd.f32 %v3156_v55, %v3075_v37 }
 0x7f1   :  { %v3253_v57 = vpop.f32.mrf.mxu1 }
 0x7f2   :  { %v3258_v62 = vadd.f32 %v3253_v57, %v3159_v56  ;;  %v3336_v1 = vpop.f32.mrf.mxu0 }
 0x7f3   :  { %v3255_v8 = vpop.f32.mrf.mxu1 }
 0x7f4   :  { %v3259_v9 = vadd.f32 %v3255_v8, %v3160_v59  ;;  %v3341_v10 = vadd.f32 %v3336_v1, %v3258_v62  ;;  %v3338_v11 = vpop.f32.mrf.mxu0 }
 0x7f5   :  { %v3421_v3 = vpop.f32.mrf.mxu1 }
 0x7f6   :  { %v3342_v12 = vadd.f32 %v3338_v11, %v3259_v9  ;;  %v3426_v13 = vadd.f32 %v3421_v3, %v3341_v10 }
 0x7f7   :  { %v3423_v60 = vpop.f32.mrf.mxu1 }
 0x7f8   :  { %v3428_v14 = vadd.f32 %v3426_v13, %v1753_v46  ;;  %v3427_v6 = vadd.f32 %v3423_v60, %v3342_v12 }
 0x7fa   :  { %v3429_v7 = vadd.f32 %v3427_v6, %v1753_v46  ;;  %v3430_v61 = vsel %vm98_vm7, %v3428_v14, 0.0 }
 0x7fc   :  { %v3431_v18 = vsel %vm98_vm7, %v3429_v7, 0.0 }
 0x7fd   :  { %v3432_v19 = vadd.f32 %v3431_v18, %v3430_v61 }
 0x7ff   :  { %3433 = vadd.xlane.f32.xlu0 %v3432_v19 }
 0x803   :  { %1770 = vadd.xlane.f32.xlu0 %v1769_v63 }
 0x888   :  { %v3434_v25 = vpop.xlane.xlu0 %3433 }
 0x889   :  { %v3435_v27 = vmul.f32 0.00390625, %v3434_v25 }
 0x88b   :  { %v3436_v28 = vsub.f32 %v3428_v14, %v3435_v27  ;;  %v3437_v29 = vsub.f32 %v3429_v7, %v3435_v27 }
 0x88c   :  { %v1771_v31 = vpop.xlane.xlu0 %1770 }
 0x88d   :  { %v1772_v38 = vmul.f32 0.00390625, %v1771_v31  ;;  %v3438_v16 = vmul.f32 %v3436_v28, %v3436_v28  ;;  %v3439_v47 = vmul.f32 %v3437_v29, %v3437_v29 }
 0x88f   :  { %v1773_v45 = vadd.f32 1e-05, %v1772_v38  ;;  %v3440_v39 = vsel %vm98_vm7, %v3438_v16, 0.0  ;;  %v3441_v46 = vsel %vm98_vm7, %v3439_v47, 0.0 }
 0x890   :  { %v3442_v48 = vadd.f32 %v3441_v46, %v3440_v39 }
 0x891   :  { %3631 = vrsqrt.f32 %v1773_v45 }
 0x892   :  { %3443 = vadd.xlane.f32.xlu1 %v3442_v48 }
 0x89e   :  { %v3632_v40 = vpop.eup %3631 }
 0x89f   :  { %v1775_v41 = vmul.f32 %v3632_v40, %v1763_v2  ;;  %v1776_v42 = vmul.f32 %v3632_v40, %v1764_v0 }
 0x8a1   :  { %v1779_v43 = vcombine.low %v1775_v41, %v1776_v42 }
 0x8a3   :  { %v1781_v44 = vadd.f32 %v3635_v35, %v1779_v43 }
 0x8a5   :  { %1782 = vst [vmem:[#allocation2] sm:$0xff] %v1781_v44 }
 0x91b   :  { %v3444_v49 = vpop.xlane.xlu1 %3443 }
 0x91c   :  { %v3445_v4 = vmul.f32 0.00390625, %v3444_v49 }
 0x91e   :  { %v3446_v34 = vadd.f32 1e-05, %v3445_v4 }
 0x920   :  { %3633 = vrsqrt.f32 %v3446_v34 }
 0x92d   :  { %v3634_v32 = vpop.eup %3633 }
 0x92e   :  { %v3448_v21 = vmul.f32 %v3634_v32, %v3436_v28  ;;  %v3449_v50 = vmul.f32 %v3634_v32, %v3437_v29 }
 0x930   :  { %v3452_v51 = vcombine.low %v3448_v21, %v3449_v50 }
 0x932   :  { %v3454_v23 = vadd.f32 %v3636_v22, %v3452_v51 }
 0x934   :  { %3456 = vst [vmem:[#allocation2 + $0x8] sm:$0xff] %v3454_v23 }
 0x935   :  { %3648 = shalt.err (!%p3645_p4)
}
 0x936   :  { %s3666_s17 = smov 128   ;;  %s3667_s18 = smov 8  }
 0x937   :  { %3468 = dma.vmem_to_hbm [thread:$0]  %s3463_s13, 256, %s4502_s6, [#allocation3], %s3666_s17, %s3666_s17, %s3667_s18  }
 0x938   :  { %3657 = dma.done.wait [#allocation3], 256  }
 0x939   :  { %3658 = vsyncadd [#allocation3], 4294967040 }
 0x93a   :  { %3472 = vsyncpa [#allocation3], 1 }

</bundles_post_ra>
